<compile_context>
chip_gen: v7x
topology: tpu7x:2x2x1
jax: 0.10.0
libtpu: 0.0.40
codegen_flags: <defaults>
</compile_context>

<pallas_src>
import jax
import jax.numpy as jnp
from jax import lax
from jax.experimental import pallas as pl
from jax.experimental.pallas import tpu as pltpu


def _make_kernel(C_in, C_out, H, W, Wp, pmax, taps, Lacc):
    """Build the per-image kernel (fully static / unrolled).

    `taps` is a list of (dy, dx) offsets sorted by (dy, dx); tap index t in
    that order selects row t of the lane-weight array.
    """
    # Group taps by row (sublane) offset dy so the sublane slice is reused by
    # every column offset sharing it.
    groups = {}  # dy -> list of (tap_index, dx), in flat tap order
    for t, (dy, dx) in enumerate(taps):
        groups.setdefault(dy, []).append((t, dx))

    def kernel(xs_ref, wlane_ref, pw_ref, o_ref):
        # xs_ref   : (1, Hp, C_in*Wp)   VMEM  reflect-padded channels-in-lanes slab
        # wlane_ref: (n_taps, 1, Lacc)  VMEM  per-tap, per-lane folded DW weights
        # pw_ref   : (C_out * C_in,)    SMEM  pointwise weights (f32 scalars)
        # o_ref    : (1, H, C_out*W)    VMEM  lane-dense output slab
        xs = xs_ref[0].astype(jnp.float32)                     # (Hp, C_in*Wp)

        # Depthwise accumulation over the folded effective kernel, all input
        # channels processed at once along the lane axis.  acc lane m maps to
        # slab lane m + pmax; channel c's valid window is [c*Wp, c*Wp + W).
        acc = jnp.zeros((H, Lacc), jnp.float32)
        for dy, tap_list in groups.items():
            rows = xs[pmax + dy: pmax + dy + H, :]             # (H, C_in*Wp)
            for (t, dx) in tap_list:
                shifted = rows[:, pmax + dx: pmax + dx + Lacc]  # (H, Lacc)
                acc = acc + shifted * wlane_ref[t]              # (1,Lacc) bcast

        # Pointwise 1x1 mix (dilation sum already folded into `acc`), then
        # assemble the lane-dense output slab: channel o occupies lane block
        # [o*W, (o+1)*W).
        outs = [jnp.zeros((H, W), jnp.float32) for _ in range(C_out)]
        for c in range(C_in):
            acc_c = acc[:, c * Wp: c * Wp + W]                  # (H, W)
            for o in range(C_out):
                outs[o] = outs[o] + acc_c * pw_ref[o * C_in + c]
        for o in range(C_out):
            o_ref[0, :, o * W:(o + 1) * W] = outs[o].astype(o_ref.dtype)

    return kernel


def dilated_separable_conv(x, dw_weight, pw_weight, dilation_values=(1, 2, 3)):
    """x: (N, C_in, H, W); dw_weight: (C_in, 1, K, K); pw_weight: (C_out, C_in, 1, 1)."""
    N, C_in, H, W = x.shape
    C_out = pw_weight.shape[0]
    K = dw_weight.shape[-1]
    dilations = tuple(int(d) for d in dilation_values)

    if K % 2 != 1:
        raise ValueError("kernel size must be odd for 'same' padding semantics")
    kc = (K - 1) // 2
    pmax = max(dilations) * kc
    # Shared-max-pad reflect trick (and jnp reflect padding itself) requires
    # the pad to be strictly smaller than the spatial dims.
    if not (pmax < H and pmax < W):
        raise ValueError(
            f"max reflect pad ({pmax}) must be < spatial dims ({H}, {W})")

    # Reflect-pad once with the maximal pad; each per-dilation reflect pad is a
    # centered sub-window of this padded image (valid because pmax < H, W).
    xp = jnp.pad(x, ((0, 0), (0, 0), (pmax, pmax), (pmax, pmax)), mode="reflect")
    Hp, Wp = H + 2 * pmax, W + 2 * pmax

    # Channels-in-lanes slab: slab[n, i, c*Wp + j] = xp[n, c, i, j].
    xs = xp.transpose(0, 2, 1, 3).reshape(N, Hp, C_in * Wp)

    # Fold the per-dilation dilated kernels into one sparse effective depthwise
    # kernel: tap offsets (dy, dx) with per-channel weights summed over all
    # (dilation, ki, kj) that land on that offset. Exact because the depthwise
    # weight is shared across dilations.
    contrib = {}  # (dy, dx) -> list of (C_in,) weight vectors
    for d in dilations:
        for ki in range(K):
            for kj in range(K):
                off = (d * (ki - kc), d * (kj - kc))
                contrib.setdefault(off, []).append(dw_weight[:, 0, ki, kj])
    taps = sorted(contrib.keys())                       # sorted by (dy, dx)
    n_taps = len(taps)
    w_eff = jnp.stack([sum(contrib[t]) for t in taps], axis=1)  # (C_in, n_taps)

    # Per-tap lane-weight rows in accumulator lane coordinates
    # (acc lane m <-> slab lane m + pmax; channel block c = [c*Wp, c*Wp + W)).
    Lacc = C_in * Wp - 2 * pmax
    m = jnp.arange(Lacc)
    ch_of_lane = m // Wp                                # in [0, C_in)
    valid_lane = (m % Wp) < W
    wlane = jnp.where(valid_lane[None, :],
                      w_eff.T[:, ch_of_lane], 0.0)      # (n_taps, Lacc)
    wlane = wlane.reshape(n_taps, 1, Lacc).astype(jnp.float32)

    pw_flat = pw_weight[:, :, 0, 0].reshape(C_out * C_in).astype(jnp.float32)

    kernel = _make_kernel(C_in, C_out, H, W, Wp, pmax, taps, Lacc)

    out_flat = pl.pallas_call(
        kernel,
        out_shape=jax.ShapeDtypeStruct((N, H, C_out * W), x.dtype),
        grid_spec=pltpu.PrefetchScalarGridSpec(
            num_scalar_prefetch=0,
            grid=(N,),
            in_specs=[
                pl.BlockSpec((1, Hp, C_in * Wp), lambda n: (n, 0, 0)),
                pl.BlockSpec((n_taps, 1, Lacc), lambda n: (0, 0, 0)),
                pl.BlockSpec(memory_space=pltpu.MemorySpace.SMEM),
            ],
            out_specs=pl.BlockSpec((1, H, C_out * W), lambda n: (n, 0, 0)),
        ),
        compiler_params=pltpu.CompilerParams(dimension_semantics=("parallel",)),
    )(xs, wlane, pw_flat)

    # Layout plumbing back to NCHW (handled by XLA, outside the kernel).
    return out_flat.reshape(N, H, C_out, W).transpose(0, 2, 1, 3)


def reference(x, dw_weight, pw_weight, dilation_values=(1, 2, 3)):
    """Pure-JAX reference matching the PyTorch forward exactly."""
    N, C_in, H, W = x.shape
    C_out = pw_weight.shape[0]
    K = dw_weight.shape[-1]
    y_sum = jnp.zeros((N, C_out, H, W), x.dtype)
    for d in dilation_values:
        pad = d * (K - 1) // 2
        xp = jnp.pad(x, ((0, 0), (0, 0), (pad, pad), (pad, pad)), mode="reflect")
        yd = lax.conv_general_dilated(
            xp, dw_weight, window_strides=(1, 1), padding="VALID",
            rhs_dilation=(d, d), feature_group_count=C_in,
            dimension_numbers=("NCHW", "OIHW", "NCHW"))
        zd = lax.conv_general_dilated(
            yd, pw_weight, window_strides=(1, 1), padding="VALID",
            dimension_numbers=("NCHW", "OIHW", "NCHW"))
        y_sum = y_sum + zd
    return y_sum


if __name__ == "__main__":
    # Small deterministic setup consistent with the module:
    #   in_channels=4, out_channels=8, kernel_size=(3, 3), dilation_values=[1, 2, 3]
    N, C_in, C_out, H, W, K = 2, 4, 8, 16, 16, 3
    dilations = (1, 2, 3)

    key = jax.random.PRNGKey(0)
    kx, kdw, kpw = jax.random.split(key, 3)
    x = jax.random.normal(kx, (N, C_in, H, W), dtype=jnp.float32)
    # depthwise weight: (C_in, 1, K, K); pointwise weight: (C_out, C_in, 1, 1);
    # biases are zero in the module's forward path.
    dw_weight = 0.1 * jax.random.normal(kdw, (C_in, 1, K, K), dtype=jnp.float32)
    pw_weight = 0.1 * jax.random.normal(kpw, (C_out, C_in, 1, 1), dtype=jnp.float32)

    out = jax.block_until_ready(
        dilated_separable_conv(x, dw_weight, pw_weight, dilations))
    ref = jax.block_until_ready(reference(x, dw_weight, pw_weight, dilations))

    assert out.shape == (N, C_out, H, W), out.shape
    assert jnp.allclose(out, ref, atol=1e-4, rtol=1e-4), \
        float(jnp.max(jnp.abs(out - ref)))

    print("KERNEL_OK")
</pallas_src>

<mosaic_0001>
module attributes {stable_mosaic.version = 11 : i64} {
  func.func @kernel(%arg0: i32, %arg1: memref<1x22x88xf32, #tpu.memory_space<vmem>>, %arg2: memref<25x1x82xf32, #tpu.memory_space<vmem>>, %arg3: memref<32xf32, #tpu.memory_space<smem>>, %arg4: memref<1x16x128xf32, #tpu.memory_space<vmem>>) attributes {dimension_semantics = [#tpu.dimension_semantics<parallel>], iteration_bounds = array<i64: 2>, scalar_prefetch = 0 : i64, scratch_operands = 0 : i64, tpu.core_type = #tpu.core_type<tc>, window_params = [{transform_indices = @transform_0, window_bounds = array<i64: 1, 22, 88>}, {pipeline_mode = #tpu.pipeline_mode<synchronous>, transform_indices = @transform_1, window_bounds = array<i64: 25, 1, 82>}, {transform_indices = @transform_2, window_bounds = array<i64: 32>}, {transform_indices = @transform_3, window_bounds = array<i64: 1, 16, 128>}]} {
    %c0 = arith.constant 0 : index
    %c0_0 = arith.constant 0 : index
    %c0_1 = arith.constant 0 : index
    %0 = vector.load %arg1[%c0, %c0_0, %c0_1] : memref<1x22x88xf32, #tpu.memory_space<vmem>>, vector<1x22x88xf32>
    %1 = vector.shape_cast %0 : vector<1x22x88xf32> to vector<22x88xf32>
    %cst = arith.constant 0.000000e+00 : f32
    %2 = vector.broadcast %cst : f32 to vector<16x82xf32>
    %3 = vector.extract_strided_slice %1 {offsets = [0, 0], sizes = [16, 88], strides = [1, 1]} : vector<22x88xf32> to vector<16x88xf32>
    %4 = vector.extract_strided_slice %3 {offsets = [0, 0], sizes = [16, 82], strides = [1, 1]} : vector<16x88xf32> to vector<16x82xf32>
    %c0_2 = arith.constant 0 : index
    %c0_3 = arith.constant 0 : index
    %c0_4 = arith.constant 0 : index
    %5 = vector.load %arg2[%c0_2, %c0_3, %c0_4] : memref<25x1x82xf32, #tpu.memory_space<vmem>>, vector<1x1x82xf32>
    %6 = vector.shape_cast %5 : vector<1x1x82xf32> to vector<1x82xf32>
    %7 = vector.broadcast %6 : vector<1x82xf32> to vector<16x82xf32>
    %8 = arith.mulf %4, %7 : vector<16x82xf32>
    %9 = arith.addf %2, %8 : vector<16x82xf32>
    %10 = vector.extract_strided_slice %3 {offsets = [0, 3], sizes = [16, 82], strides = [1, 1]} : vector<16x88xf32> to vector<16x82xf32>
    %c1 = arith.constant 1 : index
    %c0_5 = arith.constant 0 : index
    %c0_6 = arith.constant 0 : index
    %11 = vector.load %arg2[%c1, %c0_5, %c0_6] : memref<25x1x82xf32, #tpu.memory_space<vmem>>, vector<1x1x82xf32>
    %12 = vector.shape_cast %11 : vector<1x1x82xf32> to vector<1x82xf32>
    %13 = vector.broadcast %12 : vector<1x82xf32> to vector<16x82xf32>
    %14 = arith.mulf %10, %13 : vector<16x82xf32>
    %15 = arith.addf %9, %14 : vector<16x82xf32>
    %16 = vector.extract_strided_slice %3 {offsets = [0, 6], sizes = [16, 82], strides = [1, 1]} : vector<16x88xf32> to vector<16x82xf32>
    %c2 = arith.constant 2 : index
    %c0_7 = arith.constant 0 : index
    %c0_8 = arith.constant 0 : index
    %17 = vector.load %arg2[%c2, %c0_7, %c0_8] : memref<25x1x82xf32, #tpu.memory_space<vmem>>, vector<1x1x82xf32>
    %18 = vector.shape_cast %17 : vector<1x1x82xf32> to vector<1x82xf32>
    %19 = vector.broadcast %18 : vector<1x82xf32> to vector<16x82xf32>
    %20 = arith.mulf %16, %19 : vector<16x82xf32>
    %21 = arith.addf %15, %20 : vector<16x82xf32>
    %22 = vector.extract_strided_slice %1 {offsets = [1, 0], sizes = [16, 88], strides = [1, 1]} : vector<22x88xf32> to vector<16x88xf32>
    %23 = vector.extract_strided_slice %22 {offsets = [0, 1], sizes = [16, 82], strides = [1, 1]} : vector<16x88xf32> to vector<16x82xf32>
    %c3 = arith.constant 3 : index
    %c0_9 = arith.constant 0 : index
    %c0_10 = arith.constant 0 : index
    %24 = vector.load %arg2[%c3, %c0_9, %c0_10] : memref<25x1x82xf32, #tpu.memory_space<vmem>>, vector<1x1x82xf32>
    %25 = vector.shape_cast %24 : vector<1x1x82xf32> to vector<1x82xf32>
    %26 = vector.broadcast %25 : vector<1x82xf32> to vector<16x82xf32>
    %27 = arith.mulf %23, %26 : vector<16x82xf32>
    %28 = arith.addf %21, %27 : vector<16x82xf32>
    %29 = vector.extract_strided_slice %22 {offsets = [0, 3], sizes = [16, 82], strides = [1, 1]} : vector<16x88xf32> to vector<16x82xf32>
    %c4 = arith.constant 4 : index
    %c0_11 = arith.constant 0 : index
    %c0_12 = arith.constant 0 : index
    %30 = vector.load %arg2[%c4, %c0_11, %c0_12] : memref<25x1x82xf32, #tpu.memory_space<vmem>>, vector<1x1x82xf32>
    %31 = vector.shape_cast %30 : vector<1x1x82xf32> to vector<1x82xf32>
    %32 = vector.broadcast %31 : vector<1x82xf32> to vector<16x82xf32>
    %33 = arith.mulf %29, %32 : vector<16x82xf32>
    %34 = arith.addf %28, %33 : vector<16x82xf32>
    %35 = vector.extract_strided_slice %22 {offsets = [0, 5], sizes = [16, 82], strides = [1, 1]} : vector<16x88xf32> to vector<16x82xf32>
    %c5 = arith.constant 5 : index
    %c0_13 = arith.constant 0 : index
    %c0_14 = arith.constant 0 : index
    %36 = vector.load %arg2[%c5, %c0_13, %c0_14] : memref<25x1x82xf32, #tpu.memory_space<vmem>>, vector<1x1x82xf32>
    %37 = vector.shape_cast %36 : vector<1x1x82xf32> to vector<1x82xf32>
    %38 = vector.broadcast %37 : vector<1x82xf32> to vector<16x82xf32>
    %39 = arith.mulf %35, %38 : vector<16x82xf32>
    %40 = arith.addf %34, %39 : vector<16x82xf32>
    %41 = vector.extract_strided_slice %1 {offsets = [2, 0], sizes = [16, 88], strides = [1, 1]} : vector<22x88xf32> to vector<16x88xf32>
    %42 = vector.extract_strided_slice %41 {offsets = [0, 2], sizes = [16, 82], strides = [1, 1]} : vector<16x88xf32> to vector<16x82xf32>
    %c6 = arith.constant 6 : index
    %c0_15 = arith.constant 0 : index
    %c0_16 = arith.constant 0 : index
    %43 = vector.load %arg2[%c6, %c0_15, %c0_16] : memref<25x1x82xf32, #tpu.memory_space<vmem>>, vector<1x1x82xf32>
    %44 = vector.shape_cast %43 : vector<1x1x82xf32> to vector<1x82xf32>
    %45 = vector.broadcast %44 : vector<1x82xf32> to vector<16x82xf32>
    %46 = arith.mulf %42, %45 : vector<16x82xf32>
    %47 = arith.addf %40, %46 : vector<16x82xf32>
    %48 = vector.extract_strided_slice %41 {offsets = [0, 3], sizes = [16, 82], strides = [1, 1]} : vector<16x88xf32> to vector<16x82xf32>
    %c7 = arith.constant 7 : index
    %c0_17 = arith.constant 0 : index
    %c0_18 = arith.constant 0 : index
    %49 = vector.load %arg2[%c7, %c0_17, %c0_18] : memref<25x1x82xf32, #tpu.memory_space<vmem>>, vector<1x1x82xf32>
    %50 = vector.shape_cast %49 : vector<1x1x82xf32> to vector<1x82xf32>
    %51 = vector.broadcast %50 : vector<1x82xf32> to vector<16x82xf32>
    %52 = arith.mulf %48, %51 : vector<16x82xf32>
    %53 = arith.addf %47, %52 : vector<16x82xf32>
    %54 = vector.extract_strided_slice %41 {offsets = [0, 4], sizes = [16, 82], strides = [1, 1]} : vector<16x88xf32> to vector<16x82xf32>
    %c8 = arith.constant 8 : index
    %c0_19 = arith.constant 0 : index
    %c0_20 = arith.constant 0 : index
    %55 = vector.load %arg2[%c8, %c0_19, %c0_20] : memref<25x1x82xf32, #tpu.memory_space<vmem>>, vector<1x1x82xf32>
    %56 = vector.shape_cast %55 : vector<1x1x82xf32> to vector<1x82xf32>
    %57 = vector.broadcast %56 : vector<1x82xf32> to vector<16x82xf32>
    %58 = arith.mulf %54, %57 : vector<16x82xf32>
    %59 = arith.addf %53, %58 : vector<16x82xf32>
    %60 = vector.extract_strided_slice %1 {offsets = [3, 0], sizes = [16, 88], strides = [1, 1]} : vector<22x88xf32> to vector<16x88xf32>
    %61 = vector.extract_strided_slice %60 {offsets = [0, 0], sizes = [16, 82], strides = [1, 1]} : vector<16x88xf32> to vector<16x82xf32>
    %c9 = arith.constant 9 : index
    %c0_21 = arith.constant 0 : index
    %c0_22 = arith.constant 0 : index
    %62 = vector.load %arg2[%c9, %c0_21, %c0_22] : memref<25x1x82xf32, #tpu.memory_space<vmem>>, vector<1x1x82xf32>
    %63 = vector.shape_cast %62 : vector<1x1x82xf32> to vector<1x82xf32>
    %64 = vector.broadcast %63 : vector<1x82xf32> to vector<16x82xf32>
    %65 = arith.mulf %61, %64 : vector<16x82xf32>
    %66 = arith.addf %59, %65 : vector<16x82xf32>
    %67 = vector.extract_strided_slice %60 {offsets = [0, 1], sizes = [16, 82], strides = [1, 1]} : vector<16x88xf32> to vector<16x82xf32>
    %c10 = arith.constant 10 : index
    %c0_23 = arith.constant 0 : index
    %c0_24 = arith.constant 0 : index
    %68 = vector.load %arg2[%c10, %c0_23, %c0_24] : memref<25x1x82xf32, #tpu.memory_space<vmem>>, vector<1x1x82xf32>
    %69 = vector.shape_cast %68 : vector<1x1x82xf32> to vector<1x82xf32>
    %70 = vector.broadcast %69 : vector<1x82xf32> to vector<16x82xf32>
    %71 = arith.mulf %67, %70 : vector<16x82xf32>
    %72 = arith.addf %66, %71 : vector<16x82xf32>
    %73 = vector.extract_strided_slice %60 {offsets = [0, 2], sizes = [16, 82], strides = [1, 1]} : vector<16x88xf32> to vector<16x82xf32>
    %c11 = arith.constant 11 : index
    %c0_25 = arith.constant 0 : index
    %c0_26 = arith.constant 0 : index
    %74 = vector.load %arg2[%c11, %c0_25, %c0_26] : memref<25x1x82xf32, #tpu.memory_space<vmem>>, vector<1x1x82xf32>
    %75 = vector.shape_cast %74 : vector<1x1x82xf32> to vector<1x82xf32>
    %76 = vector.broadcast %75 : vector<1x82xf32> to vector<16x82xf32>
    %77 = arith.mulf %73, %76 : vector<16x82xf32>
    %78 = arith.addf %72, %77 : vector<16x82xf32>
    %79 = vector.extract_strided_slice %60 {offsets = [0, 3], sizes = [16, 82], strides = [1, 1]} : vector<16x88xf32> to vector<16x82xf32>
    %c12 = arith.constant 12 : index
    %c0_27 = arith.constant 0 : index
    %c0_28 = arith.constant 0 : index
    %80 = vector.load %arg2[%c12, %c0_27, %c0_28] : memref<25x1x82xf32, #tpu.memory_space<vmem>>, vector<1x1x82xf32>
    %81 = vector.shape_cast %80 : vector<1x1x82xf32> to vector<1x82xf32>
    %82 = vector.broadcast %81 : vector<1x82xf32> to vector<16x82xf32>
    %83 = arith.mulf %79, %82 : vector<16x82xf32>
    %84 = arith.addf %78, %83 : vector<16x82xf32>
    %85 = vector.extract_strided_slice %60 {offsets = [0, 4], sizes = [16, 82], strides = [1, 1]} : vector<16x88xf32> to vector<16x82xf32>
    %c13 = arith.constant 13 : index
    %c0_29 = arith.constant 0 : index
    %c0_30 = arith.constant 0 : index
    %86 = vector.load %arg2[%c13, %c0_29, %c0_30] : memref<25x1x82xf32, #tpu.memory_space<vmem>>, vector<1x1x82xf32>
    %87 = vector.shape_cast %86 : vector<1x1x82xf32> to vector<1x82xf32>
    %88 = vector.broadcast %87 : vector<1x82xf32> to vector<16x82xf32>
    %89 = arith.mulf %85, %88 : vector<16x82xf32>
    %90 = arith.addf %84, %89 : vector<16x82xf32>
    %91 = vector.extract_strided_slice %60 {offsets = [0, 5], sizes = [16, 82], strides = [1, 1]} : vector<16x88xf32> to vector<16x82xf32>
    %c14 = arith.constant 14 : index
    %c0_31 = arith.constant 0 : index
    %c0_32 = arith.constant 0 : index
    %92 = vector.load %arg2[%c14, %c0_31, %c0_32] : memref<25x1x82xf32, #tpu.memory_space<vmem>>, vector<1x1x82xf32>
    %93 = vector.shape_cast %92 : vector<1x1x82xf32> to vector<1x82xf32>
    %94 = vector.broadcast %93 : vector<1x82xf32> to vector<16x82xf32>
    %95 = arith.mulf %91, %94 : vector<16x82xf32>
    %96 = arith.addf %90, %95 : vector<16x82xf32>
    %97 = vector.extract_strided_slice %60 {offsets = [0, 6], sizes = [16, 82], strides = [1, 1]} : vector<16x88xf32> to vector<16x82xf32>
    %c15 = arith.constant 15 : index
    %c0_33 = arith.constant 0 : index
    %c0_34 = arith.constant 0 : index
    %98 = vector.load %arg2[%c15, %c0_33, %c0_34] : memref<25x1x82xf32, #tpu.memory_space<vmem>>, vector<1x1x82xf32>
    %99 = vector.shape_cast %98 : vector<1x1x82xf32> to vector<1x82xf32>
    %100 = vector.broadcast %99 : vector<1x82xf32> to vector<16x82xf32>
    %101 = arith.mulf %97, %100 : vector<16x82xf32>
    %102 = arith.addf %96, %101 : vector<16x82xf32>
    %103 = vector.extract_strided_slice %1 {offsets = [4, 0], sizes = [16, 88], strides = [1, 1]} : vector<22x88xf32> to vector<16x88xf32>
    %104 = vector.extract_strided_slice %103 {offsets = [0, 2], sizes = [16, 82], strides = [1, 1]} : vector<16x88xf32> to vector<16x82xf32>
    %c16 = arith.constant 16 : index
    %c0_35 = arith.constant 0 : index
    %c0_36 = arith.constant 0 : index
    %105 = vector.load %arg2[%c16, %c0_35, %c0_36] : memref<25x1x82xf32, #tpu.memory_space<vmem>>, vector<1x1x82xf32>
    %106 = vector.shape_cast %105 : vector<1x1x82xf32> to vector<1x82xf32>
    %107 = vector.broadcast %106 : vector<1x82xf32> to vector<16x82xf32>
    %108 = arith.mulf %104, %107 : vector<16x82xf32>
    %109 = arith.addf %102, %108 : vector<16x82xf32>
    %110 = vector.extract_strided_slice %103 {offsets = [0, 3], sizes = [16, 82], strides = [1, 1]} : vector<16x88xf32> to vector<16x82xf32>
    %c17 = arith.constant 17 : index
    %c0_37 = arith.constant 0 : index
    %c0_38 = arith.constant 0 : index
    %111 = vector.load %arg2[%c17, %c0_37, %c0_38] : memref<25x1x82xf32, #tpu.memory_space<vmem>>, vector<1x1x82xf32>
    %112 = vector.shape_cast %111 : vector<1x1x82xf32> to vector<1x82xf32>
    %113 = vector.broadcast %112 : vector<1x82xf32> to vector<16x82xf32>
    %114 = arith.mulf %110, %113 : vector<16x82xf32>
    %115 = arith.addf %109, %114 : vector<16x82xf32>
    %116 = vector.extract_strided_slice %103 {offsets = [0, 4], sizes = [16, 82], strides = [1, 1]} : vector<16x88xf32> to vector<16x82xf32>
    %c18 = arith.constant 18 : index
    %c0_39 = arith.constant 0 : index
    %c0_40 = arith.constant 0 : index
    %117 = vector.load %arg2[%c18, %c0_39, %c0_40] : memref<25x1x82xf32, #tpu.memory_space<vmem>>, vector<1x1x82xf32>
    %118 = vector.shape_cast %117 : vector<1x1x82xf32> to vector<1x82xf32>
    %119 = vector.broadcast %118 : vector<1x82xf32> to vector<16x82xf32>
    %120 = arith.mulf %116, %119 : vector<16x82xf32>
    %121 = arith.addf %115, %120 : vector<16x82xf32>
    %122 = vector.extract_strided_slice %1 {offsets = [5, 0], sizes = [16, 88], strides = [1, 1]} : vector<22x88xf32> to vector<16x88xf32>
    %123 = vector.extract_strided_slice %122 {offsets = [0, 1], sizes = [16, 82], strides = [1, 1]} : vector<16x88xf32> to vector<16x82xf32>
    %c19 = arith.constant 19 : index
    %c0_41 = arith.constant 0 : index
    %c0_42 = arith.constant 0 : index
    %124 = vector.load %arg2[%c19, %c0_41, %c0_42] : memref<25x1x82xf32, #tpu.memory_space<vmem>>, vector<1x1x82xf32>
    %125 = vector.shape_cast %124 : vector<1x1x82xf32> to vector<1x82xf32>
    %126 = vector.broadcast %125 : vector<1x82xf32> to vector<16x82xf32>
    %127 = arith.mulf %123, %126 : vector<16x82xf32>
    %128 = arith.addf %121, %127 : vector<16x82xf32>
    %129 = vector.extract_strided_slice %122 {offsets = [0, 3], sizes = [16, 82], strides = [1, 1]} : vector<16x88xf32> to vector<16x82xf32>
    %c20 = arith.constant 20 : index
    %c0_43 = arith.constant 0 : index
    %c0_44 = arith.constant 0 : index
    %130 = vector.load %arg2[%c20, %c0_43, %c0_44] : memref<25x1x82xf32, #tpu.memory_space<vmem>>, vector<1x1x82xf32>
    %131 = vector.shape_cast %130 : vector<1x1x82xf32> to vector<1x82xf32>
    %132 = vector.broadcast %131 : vector<1x82xf32> to vector<16x82xf32>
    %133 = arith.mulf %129, %132 : vector<16x82xf32>
    %134 = arith.addf %128, %133 : vector<16x82xf32>
    %135 = vector.extract_strided_slice %122 {offsets = [0, 5], sizes = [16, 82], strides = [1, 1]} : vector<16x88xf32> to vector<16x82xf32>
    %c21 = arith.constant 21 : index
    %c0_45 = arith.constant 0 : index
    %c0_46 = arith.constant 0 : index
    %136 = vector.load %arg2[%c21, %c0_45, %c0_46] : memref<25x1x82xf32, #tpu.memory_space<vmem>>, vector<1x1x82xf32>
    %137 = vector.shape_cast %136 : vector<1x1x82xf32> to vector<1x82xf32>
    %138 = vector.broadcast %137 : vector<1x82xf32> to vector<16x82xf32>
    %139 = arith.mulf %135, %138 : vector<16x82xf32>
    %140 = arith.addf %134, %139 : vector<16x82xf32>
    %141 = vector.extract_strided_slice %1 {offsets = [6, 0], sizes = [16, 88], strides = [1, 1]} : vector<22x88xf32> to vector<16x88xf32>
    %142 = vector.extract_strided_slice %141 {offsets = [0, 0], sizes = [16, 82], strides = [1, 1]} : vector<16x88xf32> to vector<16x82xf32>
    %c22 = arith.constant 22 : index
    %c0_47 = arith.constant 0 : index
    %c0_48 = arith.constant 0 : index
    %143 = vector.load %arg2[%c22, %c0_47, %c0_48] : memref<25x1x82xf32, #tpu.memory_space<vmem>>, vector<1x1x82xf32>
    %144 = vector.shape_cast %143 : vector<1x1x82xf32> to vector<1x82xf32>
    %145 = vector.broadcast %144 : vector<1x82xf32> to vector<16x82xf32>
    %146 = arith.mulf %142, %145 : vector<16x82xf32>
    %147 = arith.addf %140, %146 : vector<16x82xf32>
    %148 = vector.extract_strided_slice %141 {offsets = [0, 3], sizes = [16, 82], strides = [1, 1]} : vector<16x88xf32> to vector<16x82xf32>
    %c23 = arith.constant 23 : index
    %c0_49 = arith.constant 0 : index
    %c0_50 = arith.constant 0 : index
    %149 = vector.load %arg2[%c23, %c0_49, %c0_50] : memref<25x1x82xf32, #tpu.memory_space<vmem>>, vector<1x1x82xf32>
    %150 = vector.shape_cast %149 : vector<1x1x82xf32> to vector<1x82xf32>
    %151 = vector.broadcast %150 : vector<1x82xf32> to vector<16x82xf32>
    %152 = arith.mulf %148, %151 : vector<16x82xf32>
    %153 = arith.addf %147, %152 : vector<16x82xf32>
    %154 = vector.extract_strided_slice %141 {offsets = [0, 6], sizes = [16, 82], strides = [1, 1]} : vector<16x88xf32> to vector<16x82xf32>
    %c24 = arith.constant 24 : index
    %c0_51 = arith.constant 0 : index
    %c0_52 = arith.constant 0 : index
    %155 = vector.load %arg2[%c24, %c0_51, %c0_52] : memref<25x1x82xf32, #tpu.memory_space<vmem>>, vector<1x1x82xf32>
    %156 = vector.shape_cast %155 : vector<1x1x82xf32> to vector<1x82xf32>
    %157 = vector.broadcast %156 : vector<1x82xf32> to vector<16x82xf32>
    %158 = arith.mulf %154, %157 : vector<16x82xf32>
    %159 = arith.addf %153, %158 : vector<16x82xf32>
    %cst_53 = arith.constant 0.000000e+00 : f32
    %160 = vector.broadcast %cst_53 : f32 to vector<16x16xf32>
    %cst_54 = arith.constant 0.000000e+00 : f32
    %161 = vector.broadcast %cst_54 : f32 to vector<16x16xf32>
    %cst_55 = arith.constant 0.000000e+00 : f32
    %162 = vector.broadcast %cst_55 : f32 to vector<16x16xf32>
    %cst_56 = arith.constant 0.000000e+00 : f32
    %163 = vector.broadcast %cst_56 : f32 to vector<16x16xf32>
    %cst_57 = arith.constant 0.000000e+00 : f32
    %164 = vector.broadcast %cst_57 : f32 to vector<16x16xf32>
    %cst_58 = arith.constant 0.000000e+00 : f32
    %165 = vector.broadcast %cst_58 : f32 to vector<16x16xf32>
    %cst_59 = arith.constant 0.000000e+00 : f32
    %166 = vector.broadcast %cst_59 : f32 to vector<16x16xf32>
    %cst_60 = arith.constant 0.000000e+00 : f32
    %167 = vector.broadcast %cst_60 : f32 to vector<16x16xf32>
    %168 = vector.extract_strided_slice %159 {offsets = [0, 0], sizes = [16, 16], strides = [1, 1]} : vector<16x82xf32> to vector<16x16xf32>
    %c0_61 = arith.constant 0 : index
    %169 = memref.load %arg3[%c0_61] : memref<32xf32, #tpu.memory_space<smem>>
    %170 = vector.broadcast %169 : f32 to vector<16x16xf32>
    %171 = arith.mulf %168, %170 : vector<16x16xf32>
    %172 = arith.addf %160, %171 : vector<16x16xf32>
    %c4_62 = arith.constant 4 : index
    %173 = memref.load %arg3[%c4_62] : memref<32xf32, #tpu.memory_space<smem>>
    %174 = vector.broadcast %173 : f32 to vector<16x16xf32>
    %175 = arith.mulf %168, %174 : vector<16x16xf32>
    %176 = arith.addf %161, %175 : vector<16x16xf32>
    %c8_63 = arith.constant 8 : index
    %177 = memref.load %arg3[%c8_63] : memref<32xf32, #tpu.memory_space<smem>>
    %178 = vector.broadcast %177 : f32 to vector<16x16xf32>
    %179 = arith.mulf %168, %178 : vector<16x16xf32>
    %180 = arith.addf %162, %179 : vector<16x16xf32>
    %c12_64 = arith.constant 12 : index
    %181 = memref.load %arg3[%c12_64] : memref<32xf32, #tpu.memory_space<smem>>
    %182 = vector.broadcast %181 : f32 to vector<16x16xf32>
    %183 = arith.mulf %168, %182 : vector<16x16xf32>
    %184 = arith.addf %163, %183 : vector<16x16xf32>
    %c16_65 = arith.constant 16 : index
    %185 = memref.load %arg3[%c16_65] : memref<32xf32, #tpu.memory_space<smem>>
    %186 = vector.broadcast %185 : f32 to vector<16x16xf32>
    %187 = arith.mulf %168, %186 : vector<16x16xf32>
    %188 = arith.addf %164, %187 : vector<16x16xf32>
    %c20_66 = arith.constant 20 : index
    %189 = memref.load %arg3[%c20_66] : memref<32xf32, #tpu.memory_space<smem>>
    %190 = vector.broadcast %189 : f32 to vector<16x16xf32>
    %191 = arith.mulf %168, %190 : vector<16x16xf32>
    %192 = arith.addf %165, %191 : vector<16x16xf32>
    %c24_67 = arith.constant 24 : index
    %193 = memref.load %arg3[%c24_67] : memref<32xf32, #tpu.memory_space<smem>>
    %194 = vector.broadcast %193 : f32 to vector<16x16xf32>
    %195 = arith.mulf %168, %194 : vector<16x16xf32>
    %196 = arith.addf %166, %195 : vector<16x16xf32>
    %c28 = arith.constant 28 : index
    %197 = memref.load %arg3[%c28] : memref<32xf32, #tpu.memory_space<smem>>
    %198 = vector.broadcast %197 : f32 to vector<16x16xf32>
    %199 = arith.mulf %168, %198 : vector<16x16xf32>
    %200 = arith.addf %167, %199 : vector<16x16xf32>
    %201 = vector.extract_strided_slice %159 {offsets = [0, 22], sizes = [16, 16], strides = [1, 1]} : vector<16x82xf32> to vector<16x16xf32>
    %c1_68 = arith.constant 1 : index
    %202 = memref.load %arg3[%c1_68] : memref<32xf32, #tpu.memory_space<smem>>
    %203 = vector.broadcast %202 : f32 to vector<16x16xf32>
    %204 = arith.mulf %201, %203 : vector<16x16xf32>
    %205 = arith.addf %172, %204 : vector<16x16xf32>
    %c5_69 = arith.constant 5 : index
    %206 = memref.load %arg3[%c5_69] : memref<32xf32, #tpu.memory_space<smem>>
    %207 = vector.broadcast %206 : f32 to vector<16x16xf32>
    %208 = arith.mulf %201, %207 : vector<16x16xf32>
    %209 = arith.addf %176, %208 : vector<16x16xf32>
    %c9_70 = arith.constant 9 : index
    %210 = memref.load %arg3[%c9_70] : memref<32xf32, #tpu.memory_space<smem>>
    %211 = vector.broadcast %210 : f32 to vector<16x16xf32>
    %212 = arith.mulf %201, %211 : vector<16x16xf32>
    %213 = arith.addf %180, %212 : vector<16x16xf32>
    %c13_71 = arith.constant 13 : index
    %214 = memref.load %arg3[%c13_71] : memref<32xf32, #tpu.memory_space<smem>>
    %215 = vector.broadcast %214 : f32 to vector<16x16xf32>
    %216 = arith.mulf %201, %215 : vector<16x16xf32>
    %217 = arith.addf %184, %216 : vector<16x16xf32>
    %c17_72 = arith.constant 17 : index
    %218 = memref.load %arg3[%c17_72] : memref<32xf32, #tpu.memory_space<smem>>
    %219 = vector.broadcast %218 : f32 to vector<16x16xf32>
    %220 = arith.mulf %201, %219 : vector<16x16xf32>
    %221 = arith.addf %188, %220 : vector<16x16xf32>
    %c21_73 = arith.constant 21 : index
    %222 = memref.load %arg3[%c21_73] : memref<32xf32, #tpu.memory_space<smem>>
    %223 = vector.broadcast %222 : f32 to vector<16x16xf32>
    %224 = arith.mulf %201, %223 : vector<16x16xf32>
    %225 = arith.addf %192, %224 : vector<16x16xf32>
    %c25 = arith.constant 25 : index
    %226 = memref.load %arg3[%c25] : memref<32xf32, #tpu.memory_space<smem>>
    %227 = vector.broadcast %226 : f32 to vector<16x16xf32>
    %228 = arith.mulf %201, %227 : vector<16x16xf32>
    %229 = arith.addf %196, %228 : vector<16x16xf32>
    %c29 = arith.constant 29 : index
    %230 = memref.load %arg3[%c29] : memref<32xf32, #tpu.memory_space<smem>>
    %231 = vector.broadcast %230 : f32 to vector<16x16xf32>
    %232 = arith.mulf %201, %231 : vector<16x16xf32>
    %233 = arith.addf %200, %232 : vector<16x16xf32>
    %234 = vector.extract_strided_slice %159 {offsets = [0, 44], sizes = [16, 16], strides = [1, 1]} : vector<16x82xf32> to vector<16x16xf32>
    %c2_74 = arith.constant 2 : index
    %235 = memref.load %arg3[%c2_74] : memref<32xf32, #tpu.memory_space<smem>>
    %236 = vector.broadcast %235 : f32 to vector<16x16xf32>
    %237 = arith.mulf %234, %236 : vector<16x16xf32>
    %238 = arith.addf %205, %237 : vector<16x16xf32>
    %c6_75 = arith.constant 6 : index
    %239 = memref.load %arg3[%c6_75] : memref<32xf32, #tpu.memory_space<smem>>
    %240 = vector.broadcast %239 : f32 to vector<16x16xf32>
    %241 = arith.mulf %234, %240 : vector<16x16xf32>
    %242 = arith.addf %209, %241 : vector<16x16xf32>
    %c10_76 = arith.constant 10 : index
    %243 = memref.load %arg3[%c10_76] : memref<32xf32, #tpu.memory_space<smem>>
    %244 = vector.broadcast %243 : f32 to vector<16x16xf32>
    %245 = arith.mulf %234, %244 : vector<16x16xf32>
    %246 = arith.addf %213, %245 : vector<16x16xf32>
    %c14_77 = arith.constant 14 : index
    %247 = memref.load %arg3[%c14_77] : memref<32xf32, #tpu.memory_space<smem>>
    %248 = vector.broadcast %247 : f32 to vector<16x16xf32>
    %249 = arith.mulf %234, %248 : vector<16x16xf32>
    %250 = arith.addf %217, %249 : vector<16x16xf32>
    %c18_78 = arith.constant 18 : index
    %251 = memref.load %arg3[%c18_78] : memref<32xf32, #tpu.memory_space<smem>>
    %252 = vector.broadcast %251 : f32 to vector<16x16xf32>
    %253 = arith.mulf %234, %252 : vector<16x16xf32>
    %254 = arith.addf %221, %253 : vector<16x16xf32>
    %c22_79 = arith.constant 22 : index
    %255 = memref.load %arg3[%c22_79] : memref<32xf32, #tpu.memory_space<smem>>
    %256 = vector.broadcast %255 : f32 to vector<16x16xf32>
    %257 = arith.mulf %234, %256 : vector<16x16xf32>
    %258 = arith.addf %225, %257 : vector<16x16xf32>
    %c26 = arith.constant 26 : index
    %259 = memref.load %arg3[%c26] : memref<32xf32, #tpu.memory_space<smem>>
    %260 = vector.broadcast %259 : f32 to vector<16x16xf32>
    %261 = arith.mulf %234, %260 : vector<16x16xf32>
    %262 = arith.addf %229, %261 : vector<16x16xf32>
    %c30 = arith.constant 30 : index
    %263 = memref.load %arg3[%c30] : memref<32xf32, #tpu.memory_space<smem>>
    %264 = vector.broadcast %263 : f32 to vector<16x16xf32>
    %265 = arith.mulf %234, %264 : vector<16x16xf32>
    %266 = arith.addf %233, %265 : vector<16x16xf32>
    %267 = vector.extract_strided_slice %159 {offsets = [0, 66], sizes = [16, 16], strides = [1, 1]} : vector<16x82xf32> to vector<16x16xf32>
    %c3_80 = arith.constant 3 : index
    %268 = memref.load %arg3[%c3_80] : memref<32xf32, #tpu.memory_space<smem>>
    %269 = vector.broadcast %268 : f32 to vector<16x16xf32>
    %270 = arith.mulf %267, %269 : vector<16x16xf32>
    %271 = arith.addf %238, %270 : vector<16x16xf32>
    %c7_81 = arith.constant 7 : index
    %272 = memref.load %arg3[%c7_81] : memref<32xf32, #tpu.memory_space<smem>>
    %273 = vector.broadcast %272 : f32 to vector<16x16xf32>
    %274 = arith.mulf %267, %273 : vector<16x16xf32>
    %275 = arith.addf %242, %274 : vector<16x16xf32>
    %c11_82 = arith.constant 11 : index
    %276 = memref.load %arg3[%c11_82] : memref<32xf32, #tpu.memory_space<smem>>
    %277 = vector.broadcast %276 : f32 to vector<16x16xf32>
    %278 = arith.mulf %267, %277 : vector<16x16xf32>
    %279 = arith.addf %246, %278 : vector<16x16xf32>
    %c15_83 = arith.constant 15 : index
    %280 = memref.load %arg3[%c15_83] : memref<32xf32, #tpu.memory_space<smem>>
    %281 = vector.broadcast %280 : f32 to vector<16x16xf32>
    %282 = arith.mulf %267, %281 : vector<16x16xf32>
    %283 = arith.addf %250, %282 : vector<16x16xf32>
    %c19_84 = arith.constant 19 : index
    %284 = memref.load %arg3[%c19_84] : memref<32xf32, #tpu.memory_space<smem>>
    %285 = vector.broadcast %284 : f32 to vector<16x16xf32>
    %286 = arith.mulf %267, %285 : vector<16x16xf32>
    %287 = arith.addf %254, %286 : vector<16x16xf32>
    %c23_85 = arith.constant 23 : index
    %288 = memref.load %arg3[%c23_85] : memref<32xf32, #tpu.memory_space<smem>>
    %289 = vector.broadcast %288 : f32 to vector<16x16xf32>
    %290 = arith.mulf %267, %289 : vector<16x16xf32>
    %291 = arith.addf %258, %290 : vector<16x16xf32>
    %c27 = arith.constant 27 : index
    %292 = memref.load %arg3[%c27] : memref<32xf32, #tpu.memory_space<smem>>
    %293 = vector.broadcast %292 : f32 to vector<16x16xf32>
    %294 = arith.mulf %267, %293 : vector<16x16xf32>
    %295 = arith.addf %262, %294 : vector<16x16xf32>
    %c31 = arith.constant 31 : index
    %296 = memref.load %arg3[%c31] : memref<32xf32, #tpu.memory_space<smem>>
    %297 = vector.broadcast %296 : f32 to vector<16x16xf32>
    %298 = arith.mulf %267, %297 : vector<16x16xf32>
    %299 = arith.addf %266, %298 : vector<16x16xf32>
    %c0_86 = arith.constant 0 : index
    %c0_87 = arith.constant 0 : index
    %c0_88 = arith.constant 0 : index
    %300 = vector.load %arg4[%c0_86, %c0_87, %c0_88] : memref<1x16x128xf32, #tpu.memory_space<vmem>>, vector<1x16x16xf32>
    %301 = vector.shape_cast %300 : vector<1x16x16xf32> to vector<16x16xf32>
    %302 = vector.shape_cast %271 : vector<16x16xf32> to vector<1x16x16xf32>
    tpu.vector_store %arg4[%c0_86, %c0_87, %c0_88], %302 {strides = array<i32>} : memref<1x16x128xf32, #tpu.memory_space<vmem>>, vector<1x16x16xf32>,
    %c0_89 = arith.constant 0 : index
    %c0_90 = arith.constant 0 : index
    %c16_91 = arith.constant 16 : index
    %303 = vector.load %arg4[%c0_89, %c0_90, %c16_91] : memref<1x16x128xf32, #tpu.memory_space<vmem>>, vector<1x16x16xf32>
    %304 = vector.shape_cast %303 : vector<1x16x16xf32> to vector<16x16xf32>
    %305 = vector.shape_cast %275 : vector<16x16xf32> to vector<1x16x16xf32>
    tpu.vector_store %arg4[%c0_89, %c0_90, %c16_91], %305 {strides = array<i32>} : memref<1x16x128xf32, #tpu.memory_space<vmem>>, vector<1x16x16xf32>,
    %c0_92 = arith.constant 0 : index
    %c0_93 = arith.constant 0 : index
    %c32 = arith.constant 32 : index
    %306 = vector.load %arg4[%c0_92, %c0_93, %c32] : memref<1x16x128xf32, #tpu.memory_space<vmem>>, vector<1x16x16xf32>
    %307 = vector.shape_cast %306 : vector<1x16x16xf32> to vector<16x16xf32>
    %308 = vector.shape_cast %279 : vector<16x16xf32> to vector<1x16x16xf32>
    tpu.vector_store %arg4[%c0_92, %c0_93, %c32], %308 {strides = array<i32>} : memref<1x16x128xf32, #tpu.memory_space<vmem>>, vector<1x16x16xf32>,
    %c0_94 = arith.constant 0 : index
    %c0_95 = arith.constant 0 : index
    %c48 = arith.constant 48 : index
    %309 = vector.load %arg4[%c0_94, %c0_95, %c48] : memref<1x16x128xf32, #tpu.memory_space<vmem>>, vector<1x16x16xf32>
    %310 = vector.shape_cast %309 : vector<1x16x16xf32> to vector<16x16xf32>
    %311 = vector.shape_cast %283 : vector<16x16xf32> to vector<1x16x16xf32>
    tpu.vector_store %arg4[%c0_94, %c0_95, %c48], %311 {strides = array<i32>} : memref<1x16x128xf32, #tpu.memory_space<vmem>>, vector<1x16x16xf32>,
    %c0_96 = arith.constant 0 : index
    %c0_97 = arith.constant 0 : index
    %c64 = arith.constant 64 : index
    %312 = vector.load %arg4[%c0_96, %c0_97, %c64] : memref<1x16x128xf32, #tpu.memory_space<vmem>>, vector<1x16x16xf32>
    %313 = vector.shape_cast %312 : vector<1x16x16xf32> to vector<16x16xf32>
    %314 = vector.shape_cast %287 : vector<16x16xf32> to vector<1x16x16xf32>
    tpu.vector_store %arg4[%c0_96, %c0_97, %c64], %314 {strides = array<i32>} : memref<1x16x128xf32, #tpu.memory_space<vmem>>, vector<1x16x16xf32>,
    %c0_98 = arith.constant 0 : index
    %c0_99 = arith.constant 0 : index
    %c80 = arith.constant 80 : index
    %315 = vector.load %arg4[%c0_98, %c0_99, %c80] : memref<1x16x128xf32, #tpu.memory_space<vmem>>, vector<1x16x16xf32>
    %316 = vector.shape_cast %315 : vector<1x16x16xf32> to vector<16x16xf32>
    %317 = vector.shape_cast %291 : vector<16x16xf32> to vector<1x16x16xf32>
    tpu.vector_store %arg4[%c0_98, %c0_99, %c80], %317 {strides = array<i32>} : memref<1x16x128xf32, #tpu.memory_space<vmem>>, vector<1x16x16xf32>,
    %c0_100 = arith.constant 0 : index
    %c0_101 = arith.constant 0 : index
    %c96 = arith.constant 96 : index
    %318 = vector.load %arg4[%c0_100, %c0_101, %c96] : memref<1x16x128xf32, #tpu.memory_space<vmem>>, vector<1x16x16xf32>
    %319 = vector.shape_cast %318 : vector<1x16x16xf32> to vector<16x16xf32>
    %320 = vector.shape_cast %295 : vector<16x16xf32> to vector<1x16x16xf32>
    tpu.vector_store %arg4[%c0_100, %c0_101, %c96], %320 {strides = array<i32>} : memref<1x16x128xf32, #tpu.memory_space<vmem>>, vector<1x16x16xf32>,
    %c0_102 = arith.constant 0 : index
    %c0_103 = arith.constant 0 : index
    %c112 = arith.constant 112 : index
    %321 = vector.load %arg4[%c0_102, %c0_103, %c112] : memref<1x16x128xf32, #tpu.memory_space<vmem>>, vector<1x16x16xf32>
    %322 = vector.shape_cast %321 : vector<1x16x16xf32> to vector<16x16xf32>
    %323 = vector.shape_cast %299 : vector<16x16xf32> to vector<1x16x16xf32>
    tpu.vector_store %arg4[%c0_102, %c0_103, %c112], %323 {strides = array<i32>} : memref<1x16x128xf32, #tpu.memory_space<vmem>>, vector<1x16x16xf32>,
    return
  }
  func.func @transform_0(%arg0: i32) -> (i32, i32, i32) {
    %c0_i32 = arith.constant 0 : i32
    %c0_i32_0 = arith.constant 0 : i32
    %c0_i32_1 = arith.constant 0 : i32
    return %arg0, %c0_i32, %c0_i32_0 : i32, i32, i32
  }
  func.func @transform_1(%arg0: i32) -> (i32, i32, i32) {
    %c0_i32 = arith.constant 0 : i32
    %c0_i32_0 = arith.constant 0 : i32
    %c0_i32_1 = arith.constant 0 : i32
    %c0_i32_2 = arith.constant 0 : i32
    return %c0_i32, %c0_i32_0, %c0_i32_1 : i32, i32, i32
  }
  func.func @transform_2(%arg0: i32) -> i32 {
    %c0_i32 = arith.constant 0 : i32
    %c0_i32_0 = arith.constant 0 : i32
    return %c0_i32 : i32
  }
  func.func @transform_3(%arg0: i32) -> (i32, i32, i32) {
    %c0_i32 = arith.constant 0 : i32
    %c0_i32_0 = arith.constant 0 : i32
    %c0_i32_1 = arith.constant 0 : i32
    return %arg0, %c0_i32, %c0_i32_0 : i32, i32, i32
  }
}

</mosaic_0001>

<bundles_post_ra>
// kernel: tpu_custom_call.1
= control target key start
LH: loop header
LB: loop body
LE: loop exit
PB: predicated region body
PF: predicated region fallthrough
CT: control target
= control target key end

     0   :  { %8 = vsyncpa [#allocation4], 0  ;;  %s2294_s0 = inlined_call_operand.vmem [shape: f32[2,22,88], index: 0, kind: input, shape index: {}]   ;;  %s2295_s1 = inlined_call_operand.vmem [shape: f32[25,1,82], index: 1, kind: input, shape index: {}]   ;;  %s2296_s2 = inlined_call_operand.vmem [shape: f32[32], index: 2, kind: input, shape index: {}]   ;;  %s2297_s3 = inlined_call_operand.hbm [shape: f32[2,16,128], index: 3, kind: output, shape index: {}]  }
   0x1   :  { %9 = vsyncpa [#allocation3], 0 }
   0x2   :  { %11 = vsyncpa [#allocation3 + $0x1], 0  ;;  %s1723_s12 = smov 0   ;;  %s1725_s13 = smov 0  }
   0x3   :  { %s1727_s14 = smov 0   ;;  %s1729_s15 = smov 0  }
   0x4 LB: > { %s1744_s16 = sadd.s32 4294967295, %s1675_s15   ;;  %s1425_s17 = sadd.s32 4294967294, %s1675_s15   ;;  %s1675_s15 = sphi %s1729_s15, %s2304_s15   ;;  %s1671_s14 = sphi %s1727_s14, %s2303_s14   ;;  %s1667_s13 = sphi %s1725_s13, %s2302_s13   ;;  %s1663_s12 = sphi %s1723_s12, %s2301_s12  }
   0x5   : > { %s1748_s18 = sadd.s32 1, %s1675_s15   ;;  %s92_s19 = sadd.s32 1, %s1671_s14 }
   0x6   : > { %s89_s20 = ssub.s32 %s1675_s15, %s1748_s18  ;;  %p102_p0 = scmp.ne.s32.totalorder %s1671_s14, %s1667_s13 }
   0x7   : > { %p90_p1 = scmp.eq.s32.totalorder %s89_s20, 0  ;;  %p103_p2 = scmp.eq.s32.totalorder %s1744_s16, 1 }
   0x8   : > { %p108_p3 = scmp.ne.s32.totalorder %s1667_s13, %s1663_s12  ;;  %p109_p4 = scmp.eq.s32.totalorder %s1425_s17, 1 }
   0x9   : > { %s1759_s21 = scalar_select %p90_p1, %s1671_s14, %s92_s19  }
   0xa   : > { %p1761_p5 = por %p103_p2, %p102_p0  ;;  %p1765_p6 = por %p109_p4, %p108_p3 }
   0xb   : > { %p1426_p7 = scmp.ge.s32.totalorder %s1675_s15, 1  ;;  %p116_p8 = scmp.lt.s32.totalorder %s1675_s15, 3 }
   0xc   : > { %p1534_p9 = scmp.eq.s32.totalorder %s1744_s16, 0  ;;  %s132_s27 = sshll.u32 %s2296_s2, 4  ;;  %s133_s27 = int_to_ptr.vmem [resolvable:$true] %s132_s27 }
   0xd   : > { %p1772_p10 = pnand %p1426_p7, %p116_p8  ;;  %s1594_s28 = scalar_lea.vmem %s133_s27, 16 }
   0xe   : > { %p1595_p13 = scmp.ne.s32.totalorder %s133_s27, %s1594_s28  ;;  %p1602_p3 = scmp.lt.s32.totalorder %s133_s27, %s133_s27 }
   0xf   : > { %p1526_p11 = pneg %p1772_p10  ;;  %p1603_p4 = scmp.lt.s32.totalorder %s1594_s28, %s1594_s28 }
  0x11   : > { %p1527_p12 = pnand %p1534_p9, %p1526_p11  ;;  %p1604_p7 = por %p1603_p4, %p1602_p3 }
  0x13   : > { %p1596_p0 = pneg %p1527_p12 }
  0x15   : > { %p1597_p1 = pnand %p1596_p0, %p1595_p13 }
  0x17   : > { %p1598_p2 = pneg %p1597_p1 }
  0x19   : > { %p1605_p8 = pnand %p1604_p7, %p1598_p2 }
  0x1b   : > { %1608 = shalt.err (!%p1605_p8)
}
  0x1c   : > { %s1677_s29 = smov [#allocation2]   ;;  %153 = sbr.rel (%p1772_p10) target bundleno = 686 (0x2ae), region = 32 }
  0x1d   : > { %1529 = dma.vmem_to_smem (!%p1527_p12), %s133_s27, 16, %s1677_s29, [#allocation4]  }
  0x23   : > { %1654 = dma.done.wait (%p1534_p9), [#allocation4], 16  }
  0x24   : > { %1656 = vsyncadd (%p1534_p9), [#allocation4], 4294967280 }
  0x25   : > { %159 = sfence }
  0x26   : > { %v1435_v0 = vld [vmem:[%s2295_s1 + $0x1] ss:$0 sm:$0xff]  ;;  %v1437_v1 = vld [vmem:[%s2295_s1 + $0x2] ss:$0 sm:$0xff]  ;;  %s1678_s7 = smov 3   ;;  %s1679_s8 = smov 6  }
  0x27   : > { %204 = vrot.lane.b32.xlu0 %v1435_v0, %s1678_s7  ;;  %226 = vrot.lane.b32.xlu1 %v1437_v1, %s1679_s8  ;;  %v1439_v2 = vld [vmem:[%s2295_s1 + $0x3] ss:$0 sm:$0xff]  ;;  %v1441_v3 = vld [vmem:[%s2295_s1 + $0x4] ss:$0 sm:$0xff]  ;;  %s1680_s19 = smov 1   ;;  %s1681_s27 = smov 5  }
  0x28   : > { %v1443_v4 = vld [vmem:[%s2295_s1 + $0x5] ss:$0 sm:$0xff]  ;;  %v1445_v5 = vld [vmem:[%s2295_s1 + $0x6] ss:$0 sm:$0xff]  ;;  %s1682_s28 = smov 2   ;;  %s1683_s6 = smov 4  }
  0x29   : > { %v1447_v6 = vld [vmem:[%s2295_s1 + $0x7] ss:$0 sm:$0xff]  ;;  %v1449_v7 = vld [vmem:[%s2295_s1 + $0x8] ss:$0 sm:$0xff]  ;;  %v1453_v8 = vld [vmem:[%s2295_s1 + $0xa] ss:$0 sm:$0xff] }
  0x2a   : > { %v1455_v9 = vld [vmem:[%s2295_s1 + $0xb] ss:$0 sm:$0xff]  ;;  %v1457_v10 = vld [vmem:[%s2295_s1 + $0xc] ss:$0 sm:$0xff]  ;;  %v1459_v11 = vld [vmem:[%s2295_s1 + $0xd] ss:$0 sm:$0xff] }
  0x2b   : > { %248 = vrot.lane.b32.xlu0 %v1439_v2, %s1680_s19  ;;  %278 = vrot.lane.b32.xlu1 %v1441_v3, %s1678_s7  ;;  %v1461_v12 = vld [vmem:[%s2295_s1 + $0xe] ss:$0 sm:$0xff]  ;;  %v1463_v13 = vld [vmem:[%s2295_s1 + $0xf] ss:$0 sm:$0xff]  ;;  %p178_p9 = scmp.lt.s32.totalorder %s1744_s16, 1  ;;  %vm257_vm0 = vcmask 1046528  }
  0x2c   : > { %v1465_v14 = vld [vmem:[%s2295_s1 + $0x10] ss:$0 sm:$0xff]  ;;  %v1467_v15 = vld [vmem:[%s2295_s1 + $0x11] ss:$0 sm:$0xff]  ;;  %v1469_v16 = vld [vmem:[%s2295_s1 + $0x12] ss:$0 sm:$0xff] }
  0x2d   : > { %v1471_v17 = vld [vmem:[%s2295_s1 + $0x13] ss:$0 sm:$0xff]  ;;  %v1473_v18 = vld [vmem:[%s2295_s1 + $0x14] ss:$0 sm:$0xff]  ;;  %v1475_v19 = vld [vmem:[%s2295_s1 + $0x15] ss:$0 sm:$0xff] }
  0x2e   : > { %v1479_v20 = vld [vmem:[%s2295_s1 + $0x17] ss:$0 sm:$0xff]  ;;  %v1481_v21 = vld [vmem:[%s2295_s1 + $0x18] ss:$0 sm:$0xff]  ;;  %vm345_vm1 = vcmask 1045504   ;;  %s1687_s25 = smov 123  }
  0x2f   : > { %307 = vrot.lane.b32.xlu0 %v1443_v4, %s1681_s27  ;;  %336 = vrot.lane.b32.xlu1 %v1445_v5, %s1682_s28  ;;  %s1688_s26 = smov 126   ;;  %vm431_vm2 = vcmask 1044480   ;;  %s1689_s29 = smov 124   ;;  %vm631_vm3 = vcmask 1043456   ;;  %vm719_vm4 = vcmask 1042432   ;;  %vm805_vm5 = vcmask 1041408  }
  0x30   : > { %s1498_s17 = sld [smem:[#allocation2 + $0x6]]  ;;  %s1690_s20 = smov 106   ;;  %vm1257_vm6 = vcmask 130048   ;;  %vm1268_vm7 = vcmask 261248   ;;  %vm1279_vm8 = vcmask 392448   ;;  %vm1290_vm9 = vcmask 523648  }
  0x31   : > { %s1501_s30 = sld [smem:[#allocation2 + $0x12]]  ;;  %s1507_s4 = sld [smem:[#allocation2 + $0xb]]  ;;  %vm1301_vm10 = vcmask 654848   ;;  %vm1312_vm11 = vcmask 786048   ;;  %vm1323_vm12 = vcmask 917248   ;;  %vm1334_vm13 = vcmask 1048448  }
  0x32   : > { %s1692_s5 = smov 62   ;;  %s1502_s9 = sld [smem:[#allocation2 + $0x16]] }
  0x33   : > { %366 = vrot.lane.b32.xlu0 %v1447_v6, %s1678_s7  ;;  %395 = vrot.lane.b32.xlu1 %v1449_v7, %s1683_s6  ;;  %s1508_s10 = sld [smem:[#allocation2 + $0xf]] }
  0x37   : > { %448 = vrot.lane.b32.xlu0 %v1453_v8, %s1680_s19  ;;  %477 = vrot.lane.b32.xlu1 %v1455_v9, %s1682_s28 }
  0x3b   : > { %506 = vrot.lane.b32.xlu0 %v1457_v10, %s1678_s7  ;;  %535 = vrot.lane.b32.xlu1 %v1459_v11, %s1683_s6 }
  0x3f   : > { %564 = vrot.lane.b32.xlu0 %v1461_v12, %s1681_s27  ;;  %593 = vrot.lane.b32.xlu1 %v1463_v13, %s1679_s8 }
  0x43   : > { %622 = vrot.lane.b32.xlu0 %v1465_v14, %s1682_s28  ;;  %652 = vrot.lane.b32.xlu1 %v1467_v15, %s1678_s7  ;;  %s1496_s28 = sld [smem:[#allocation2 + $0x1d]] }
  0x47   : > { %681 = vrot.lane.b32.xlu0 %v1469_v16, %s1683_s6  ;;  %710 = vrot.lane.b32.xlu1 %v1471_v17, %s1680_s19  ;;  %s179_s19 = scalar_select %p178_p9, %s1744_s16, 1 }
  0x48   : > { %s1490_s6 = sld [smem:[#allocation2 + $0x5]] }
  0x49   : > { %s1519_s11 = smul.u32 24, %s179_s19  ;;  %s1491_s19 = sld [smem:[#allocation2 + $0x9]] }
  0x4b   : > { %740 = vrot.lane.b32.xlu0 %v1473_v18, %s1678_s7  ;;  %769 = vrot.lane.b32.xlu1 %v1475_v19, %s1681_s27  ;;  %s182_s24 = scalar_lea.vmem %s2294_s0, %s1519_s11  ;;  %s1686_s27 = smov 127  }
  0x4c   : > { %v1876_v22 = vld [vmem:[%s182_s24] sm:$0xff]  ;;  %v1878_v23 = vld [vmem:[%s182_s24 + $0x8] sm:$0xff]  ;;  %v1882_v28 = vld [vmem:[%s182_s24 + $0x10] sm:$0x3f]  ;;  %s1492_s11 = sld [smem:[#allocation2 + $0xd]]  ;;  %s1493_s24 = sld [smem:[#allocation2 + $0x11]] }
  0x4f   : > { %822 = vrot.lane.b32.xlu0 %v1479_v20, %s1678_s7  ;;  %851 = vrot.lane.b32.xlu1 %v1481_v21, %s1679_s8  ;;  %s1684_s7 = smov 125   ;;  %s1685_s8 = smov 122  }
  0x99   : > { %v205_v24 = vpop.permute.xlu0 %204  ;;  %v227_v25 = vpop.permute.xlu1 %226 }
  0x9a   : > { %v207_v26 = vmul.f32 %v205_v24, %v1876_v22  ;;  %v208_v27 = vmul.f32 %v205_v24, %v1878_v23  ;;  %v229_v29 = vmul.f32 %v227_v25, %v1876_v22  ;;  %v230_v30 = vmul.f32 %v227_v25, %v1878_v23 }
  0x9c   : > { %213 = vrot.lane.b32.xlu1 %v208_v27, %s1684_s7  ;;  %211 = vrot.lane.b32.xlu0 %v207_v26, %s1684_s7 }
  0x9d   : > { %v249_v31 = vpop.permute.xlu0 %248  ;;  %v279_v32 = vpop.permute.xlu1 %278 }
  0x9e   : > { %v251_v33 = vmul.f32 %v249_v31, %v1876_v22  ;;  %v252_v34 = vmul.f32 %v249_v31, %v1878_v23  ;;  %v253_v35 = vmul.f32 %v249_v31, %v1882_v28  ;;  %v281_v36 = vmul.f32 %v279_v32, %v1876_v22 }
  0x9f   : > { %v282_v37 = vmul.f32 %v279_v32, %v1878_v23  ;;  %v283_v38 = vmul.f32 %v279_v32, %v1882_v28 }
  0xa0   : > { %235 = vrot.lane.b32.xlu1 %v230_v30, %s1685_s8  ;;  %233 = vrot.lane.b32.xlu0 %v229_v29, %s1685_s8  ;;  %v259_v39 = vrot.slane %v252_v34, 1  ;;  %v261_v40 = vrot.slane %v253_v35, 1  ;;  %v258_v41 = vrot.slane %v251_v33, 1  ;;  %v287_v45 = vrot.slane %v281_v36, 1 }
  0xa1   : > { %v308_v42 = vpop.permute.xlu0 %307  ;;  %v288_v43 = vrot.slane %v282_v37, 1  ;;  %v290_v44 = vrot.slane %v283_v38, 1  ;;  %v337_v46 = vpop.permute.xlu1 %336 }
  0xa2   : > { %v262_v47 = vsel %vm257_vm0, %v259_v39, %v261_v40  ;;  %v260_v48 = vsel %vm257_vm0, %v258_v41, %v259_v39  ;;  %v310_v49 = vmul.f32 %v308_v42, %v1876_v22  ;;  %v311_v50 = vmul.f32 %v308_v42, %v1878_v23 }
  0xa3   : > { %v312_v51 = vmul.f32 %v308_v42, %v1882_v28  ;;  %v291_v52 = vsel %vm257_vm0, %v288_v43, %v290_v44  ;;  %v339_v53 = vmul.f32 %v337_v46, %v1876_v22  ;;  %v289_v56 = vsel %vm257_vm0, %v287_v45, %v288_v43 }
  0xa4   : > { %265 = vrot.lane.b32.xlu1 %v262_v47, %s1686_s27  ;;  %263 = vrot.lane.b32.xlu0 %v260_v48, %s1686_s27  ;;  %v317_v54 = vrot.slane %v311_v50, 1  ;;  %v316_v55 = vrot.slane %v310_v49, 1  ;;  %v340_v57 = vmul.f32 %v337_v46, %v1878_v23  ;;  %v341_v58 = vmul.f32 %v337_v46, %v1882_v28 }
  0xa5   : > { %v319_v59 = vrot.slane %v312_v51, 1  ;;  %v367_v60 = vpop.permute.xlu0 %366  ;;  %v346_v0 = vrot.slane %v339_v53, 2  ;;  %v396_v5 = vpop.permute.xlu1 %395 }
  0xa6   : > { %v318_v61 = vsel %vm257_vm0, %v316_v55, %v317_v54  ;;  %v370_v62 = vmul.f32 %v367_v60, %v1878_v23  ;;  %v371_v63 = vmul.f32 %v367_v60, %v1882_v28  ;;  %v369_v2 = vmul.f32 %v367_v60, %v1876_v22 }
  0xa7   : > { %v320_v1 = vsel %vm257_vm0, %v317_v54, %v319_v59  ;;  %v347_v3 = vrot.slane %v340_v57, 2  ;;  %v349_v4 = vrot.slane %v341_v58, 2  ;;  %v398_v6 = vmul.f32 %v396_v5, %v1876_v22 }
  0xa8   : > { %294 = vrot.lane.b32.xlu1 %v291_v52, %s1684_s7  ;;  %292 = vrot.lane.b32.xlu0 %v289_v56, %s1684_s7  ;;  %v399_v7 = vmul.f32 %v396_v5, %v1878_v23  ;;  %v376_v8 = vrot.slane %v370_v62, 2  ;;  %v378_v9 = vrot.slane %v371_v63, 2  ;;  %v400_v12 = vmul.f32 %v396_v5, %v1882_v28 }
  0xa9   : > { %v350_v10 = vsel %vm345_vm1, %v347_v3, %v349_v4  ;;  %v348_v11 = vsel %vm345_vm1, %v346_v0, %v347_v3  ;;  %v375_v13 = vrot.slane %v369_v2, 2  ;;  %v449_v14 = vpop.permute.xlu0 %448  ;;  %v404_v18 = vrot.slane %v398_v6, 2  ;;  %v478_v25 = vpop.permute.xlu1 %477  ;;  %v1961_v2 = vld [vmem:[%s2295_s1 + $0x9] ss:$0 sm:$0xff] }
  0xaa   : > { %v379_v15 = vsel %vm345_vm1, %v376_v8, %v378_v9  ;;  %v452_v16 = vmul.f32 %v449_v14, %v1878_v23  ;;  %v453_v17 = vmul.f32 %v449_v14, %v1882_v28  ;;  %v451_v20 = vmul.f32 %v449_v14, %v1876_v22 }
  0xab   : > { %v377_v19 = vsel %vm345_vm1, %v375_v13, %v376_v8  ;;  %v405_v21 = vrot.slane %v399_v7, 2  ;;  %v407_v24 = vrot.slane %v400_v12, 2  ;;  %v480_v26 = vmul.f32 %v478_v25, %v1876_v22 }
  0xac   : > { %323 = vrot.lane.b32.xlu1 %v320_v1, %s1687_s25  ;;  %321 = vrot.lane.b32.xlu0 %v318_v61, %s1687_s25  ;;  %v481_v27 = vmul.f32 %v478_v25, %v1878_v23  ;;  %v458_v29 = vrot.slane %v452_v16, 3  ;;  %v460_v30 = vrot.slane %v453_v17, 3  ;;  %v482_v33 = vmul.f32 %v478_v25, %v1882_v28 }
  0xad   : > { %v408_v31 = vsel %vm345_vm1, %v405_v21, %v407_v24  ;;  %v406_v32 = vsel %vm345_vm1, %v404_v18, %v405_v21  ;;  %v457_v34 = vrot.slane %v451_v20, 3  ;;  %v507_v35 = vpop.permute.xlu0 %506  ;;  %v486_v39 = vrot.slane %v480_v26, 3  ;;  %v536_v44 = vpop.permute.xlu1 %535 }
  0xae   : > { %v461_v36 = vsel %vm431_vm2, %v458_v29, %v460_v30  ;;  %v510_v37 = vmul.f32 %v507_v35, %v1878_v23  ;;  %v511_v38 = vmul.f32 %v507_v35, %v1882_v28  ;;  %v509_v41 = vmul.f32 %v507_v35, %v1876_v22 }
  0xaf   : > { %v459_v40 = vsel %vm431_vm2, %v457_v34, %v458_v29  ;;  %v487_v42 = vrot.slane %v481_v27, 3  ;;  %v489_v43 = vrot.slane %v482_v33, 3  ;;  %v538_v45 = vmul.f32 %v536_v44, %v1876_v22 }
  0xb0   : > { %353 = vrot.lane.b32.xlu1 %v350_v10, %s1688_s26  ;;  %351 = vrot.lane.b32.xlu0 %v348_v11, %s1688_s26  ;;  %v539_v46 = vmul.f32 %v536_v44, %v1878_v23  ;;  %v516_v47 = vrot.slane %v510_v37, 3  ;;  %v518_v48 = vrot.slane %v511_v38, 3  ;;  %v540_v52 = vmul.f32 %v536_v44, %v1882_v28 }
  0xb1   : > { %v565_v49 = vpop.permute.xlu0 %564  ;;  %v490_v50 = vsel %vm431_vm2, %v487_v42, %v489_v43  ;;  %v488_v51 = vsel %vm431_vm2, %v486_v39, %v487_v42  ;;  %v515_v53 = vrot.slane %v509_v41, 3  ;;  %v544_v57 = vrot.slane %v538_v45, 3  ;;  %v594_v58 = vpop.permute.xlu1 %593 }
  0xb2   : > { %v568_v54 = vmul.f32 %v565_v49, %v1878_v23  ;;  %v569_v55 = vmul.f32 %v565_v49, %v1882_v28  ;;  %v519_v56 = vsel %vm431_vm2, %v516_v47, %v518_v48  ;;  %v567_v60 = vmul.f32 %v565_v49, %v1876_v22 }
  0xb3   : > { %v517_v59 = vsel %vm431_vm2, %v515_v53, %v516_v47  ;;  %v545_v61 = vrot.slane %v539_v46, 3  ;;  %v547_v62 = vrot.slane %v540_v52, 3  ;;  %v596_v63 = vmul.f32 %v594_v58, %v1876_v22 }
  0xb4   : > { %382 = vrot.lane.b32.xlu1 %v379_v15, %s1684_s7  ;;  %380 = vrot.lane.b32.xlu0 %v377_v19, %s1684_s7  ;;  %v574_v0 = vrot.slane %v568_v54, 3  ;;  %v576_v1 = vrot.slane %v569_v55, 3  ;;  %v597_v3 = vmul.f32 %v594_v58, %v1878_v23  ;;  %v598_v6 = vmul.f32 %v594_v58, %v1882_v28  ;;  %v2014_v55 = vld [vmem:[%s2295_s1 + $0x16] ss:$0 sm:$0xff] }
  0xb5   : > { %v548_v4 = vsel %vm431_vm2, %v545_v61, %v547_v62  ;;  %v546_v5 = vsel %vm431_vm2, %v544_v57, %v545_v61  ;;  %v573_v7 = vrot.slane %v567_v60, 3  ;;  %v623_v8 = vpop.permute.xlu0 %622  ;;  %v1971_v9 = vmul.f32 %v1961_v2, %v1878_v23  ;;  %v653_v20 = vpop.permute.xlu1 %652 }
  0xb6   : > { %v577_v10 = vsel %vm431_vm2, %v574_v0, %v576_v1  ;;  %v602_v11 = vrot.slane %v596_v63, 3  ;;  %v427_v12 = vmul.f32 %v1961_v2, %v1882_v28  ;;  %v625_v13 = vmul.f32 %v623_v8, %v1876_v22 }
  0xb7   : > { %v626_v14 = vmul.f32 %v623_v8, %v1878_v23  ;;  %v627_v15 = vmul.f32 %v623_v8, %v1882_v28  ;;  %v433_v16 = vrot.slane %v1971_v9, 3  ;;  %v575_v17 = vsel %vm431_vm2, %v573_v7, %v574_v0 }
  0xb8   : > { %411 = vrot.lane.b32.xlu1 %v408_v31, %s1689_s29  ;;  %409 = vrot.lane.b32.xlu0 %v406_v32, %s1689_s29  ;;  %v603_v18 = vrot.slane %v597_v3, 3  ;;  %v605_v19 = vrot.slane %v598_v6, 3  ;;  %v435_v21 = vrot.slane %v427_v12, 3  ;;  %v655_v25 = vmul.f32 %v653_v20, %v1876_v22 }
  0xb9   : > { %v656_v26 = vmul.f32 %v653_v20, %v1878_v23  ;;  %v633_v27 = vrot.slane %v626_v14, 4  ;;  %v635_v29 = vrot.slane %v627_v15, 4  ;;  %v682_v30 = vpop.permute.xlu0 %681  ;;  %v657_v33 = vmul.f32 %v653_v20, %v1882_v28  ;;  %v711_v43 = vpop.permute.xlu1 %710 }
  0xba   : > { %v1986_v24 = vsel %vm431_vm2, %v433_v16, %v435_v21  ;;  %v606_v31 = vsel %vm431_vm2, %v603_v18, %v605_v19  ;;  %v604_v32 = vsel %vm431_vm2, %v602_v11, %v603_v18  ;;  %v632_v34 = vrot.slane %v625_v13, 4 }
  0xbb   : > { %v685_v35 = vmul.f32 %v682_v30, %v1878_v23  ;;  %v636_v37 = vsel %vm631_vm3, %v633_v27, %v635_v29  ;;  %v661_v38 = vrot.slane %v655_v25, 4  ;;  %v662_v41 = vrot.slane %v656_v26, 4 }
  0xbc   : > { %464 = vrot.lane.b32.xlu1 %v461_v36, %s1686_s27  ;;  %462 = vrot.lane.b32.xlu0 %v459_v40, %s1686_s27  ;;  %v686_v36 = vmul.f32 %v682_v30, %v1882_v28  ;;  %v634_v39 = vsel %vm631_vm3, %v632_v34, %v633_v27  ;;  %v684_v40 = vmul.f32 %v682_v30, %v1876_v22  ;;  %v664_v42 = vrot.slane %v657_v33, 4 }
  0xbd   : > { %v691_v44 = vrot.slane %v685_v35, 4  ;;  %v713_v46 = vmul.f32 %v711_v43, %v1876_v22  ;;  %v714_v47 = vmul.f32 %v711_v43, %v1878_v23  ;;  %v741_v48 = vpop.permute.xlu0 %740  ;;  %v770_v58 = vpop.permute.xlu1 %769  ;;  %v801_v60 = vmul.f32 %v2014_v55, %v1882_v28 }
  0xbe   : > { %v693_v45 = vrot.slane %v686_v36, 4  ;;  %v665_v49 = vsel %vm631_vm3, %v662_v41, %v664_v42  ;;  %v690_v52 = vrot.slane %v684_v40, 4  ;;  %v744_v54 = vmul.f32 %v741_v48, %v1878_v23 }
  0xbf   : > { %v720_v57 = vrot.slane %v713_v46, 5  ;;  %v743_v62 = vmul.f32 %v741_v48, %v1876_v22  ;;  %v721_v63 = vrot.slane %v714_v47, 5  ;;  %v809_v3 = vrot.slane %v801_v60, 6 }
  0xc0   : > { %493 = vrot.lane.b32.xlu1 %v490_v50, %s1688_s26  ;;  %491 = vrot.lane.b32.xlu0 %v488_v51, %s1688_s26  ;;  %v663_v50 = vsel %vm631_vm3, %v661_v38, %v662_v41  ;;  %v715_v51 = vmul.f32 %v711_v43, %v1882_v28  ;;  %v694_v53 = vsel %vm631_vm3, %v691_v44, %v693_v45  ;;  %v750_v6 = vrot.slane %v744_v54, 5 }
  0xc1   : > { %v692_v61 = vsel %vm631_vm3, %v690_v52, %v691_v44  ;;  %v722_v11 = vsel %vm719_vm4, %v720_v57, %v721_v63  ;;  %v774_v12 = vmul.f32 %v770_v58, %v1882_v28  ;;  %v749_v13 = vrot.slane %v743_v62, 5  ;;  %v823_v14 = vpop.permute.xlu0 %822  ;;  %v852_v27 = vpop.permute.xlu1 %851 }
  0xc2   : > { %v723_v0 = vrot.slane %v715_v51, 5  ;;  %v826_v18 = vmul.f32 %v823_v14, %v1878_v23  ;;  %v827_v21 = vmul.f32 %v823_v14, %v1882_v28  ;;  %v854_v29 = vmul.f32 %v852_v27, %v1876_v22 }
  0xc3   : > { %v751_v20 = vsel %vm719_vm4, %v749_v13, %v750_v6  ;;  %v781_v26 = vrot.slane %v774_v12, 5  ;;  %v855_v30 = vmul.f32 %v852_v27, %v1878_v23 }
  0xc4   : > { %522 = vrot.lane.b32.xlu1 %v519_v56, %s1684_s7  ;;  %520 = vrot.lane.b32.xlu0 %v517_v59, %s1684_s7  ;;  %v745_v56 = vmul.f32 %v741_v48, %v1882_v28  ;;  %v2021_v59 = vmul.f32 %v2014_v55, %v1878_v23  ;;  %v834_v35 = vrot.slane %v827_v21, 6 }
  0xc5   : > { %v861_v40 = vrot.slane %v855_v30, 6 }
  0xc6   : > { %v807_v1 = vrot.slane %v2021_v59, 6  ;;  %v752_v7 = vrot.slane %v745_v56, 5 }
  0xc8   : > { %551 = vrot.lane.b32.xlu1 %v548_v4, %s1689_s29  ;;  %549 = vrot.lane.b32.xlu0 %v546_v5, %s1689_s29  ;;  %v772_v4 = vmul.f32 %v770_v58, %v1876_v22  ;;  %v773_v5 = vmul.f32 %v770_v58, %v1878_v23  ;;  %v2035_v8 = vsel %vm805_vm5, %v807_v1, %v809_v3  ;;  %v1433_v58 = vld [vmem:[%s2295_s1] ss:$0 sm:$0xff] }
  0xc9   : > { %v753_v15 = vsel %vm719_vm4, %v750_v6, %v752_v7  ;;  %v194_v62 = vmul.f32 %v1433_v58, %v1878_v23 }
  0xca   : > { %v778_v19 = vrot.slane %v772_v4, 5  ;;  %v779_v25 = vrot.slane %v773_v5, 5 }
  0xcc   : > { %580 = vrot.lane.b32.xlu1 %v577_v10, %s1687_s25  ;;  %578 = vrot.lane.b32.xlu0 %v575_v17, %s1687_s25  ;;  %v724_v10 = vsel %vm719_vm4, %v721_v63, %v723_v0  ;;  %v825_v17 = vmul.f32 %v823_v14, %v1876_v22  ;;  %v782_v33 = vsel %vm719_vm4, %v779_v25, %v781_v26 }
  0xcd   : > { %v780_v34 = vsel %vm719_vm4, %v778_v19, %v779_v25  ;;  %v193_v63 = vmul.f32 %v1433_v58, %v1876_v22 }
  0xce   : > { %v831_v36 = vrot.slane %v825_v17, 6  ;;  %v425_v17 = vmul.f32 %v1961_v2, %v1876_v22 }
  0xd0   : > { %609 = vrot.lane.b32.xlu1 %v606_v31, %s1685_s8  ;;  %607 = vrot.lane.b32.xlu0 %v604_v32, %s1685_s8  ;;  %v856_v31 = vmul.f32 %v852_v27, %v1882_v28  ;;  %v832_v32 = vrot.slane %v826_v18, 6  ;;  %v432_v26 = vrot.slane %v425_v17, 3 }
  0xd2   : > { %v835_v38 = vsel %vm805_vm5, %v832_v32, %v834_v35  ;;  %v863_v41 = vrot.slane %v856_v31, 6 }
  0xd4   : > { %639 = vrot.lane.b32.xlu1 %v636_v37, %s1688_s26  ;;  %637 = vrot.lane.b32.xlu0 %v634_v39, %s1688_s26  ;;  %v860_v37 = vrot.slane %v854_v29, 6  ;;  %v833_v39 = vsel %vm805_vm5, %v831_v36, %v832_v32  ;;  %v864_v28 = vsel %vm805_vm5, %v861_v40, %v863_v41  ;;  %s1506_s26 = sld [smem:[#allocation2 + $0x7]] }
  0xd6   : > { %v862_v42 = vsel %vm805_vm5, %v860_v37, %v861_v40 }
  0xd8   : > { %668 = vrot.lane.b32.xlu1 %v665_v49, %s1684_s7  ;;  %666 = vrot.lane.b32.xlu0 %v663_v50, %s1684_s7 }
  0xdc   : > { %697 = vrot.lane.b32.xlu1 %v694_v53, %s1689_s29  ;;  %695 = vrot.lane.b32.xlu0 %v692_v61, %s1689_s29  ;;  %s1495_s29 = sld [smem:[#allocation2 + $0x19]] }
  0xe0   : > { %727 = vrot.lane.b32.xlu1 %v724_v10, %s1686_s27  ;;  %725 = vrot.lane.b32.xlu0 %v722_v11, %s1686_s27  ;;  %s1691_s27 = smov 84  }
  0xe4   : > { %756 = vrot.lane.b32.xlu1 %v753_v15, %s1684_s7  ;;  %754 = vrot.lane.b32.xlu0 %v751_v20, %s1684_s7 }
  0xe8   : > { %785 = vrot.lane.b32.xlu1 %v782_v33, %s1687_s25  ;;  %783 = vrot.lane.b32.xlu0 %v780_v34, %s1687_s25  ;;  %v434_v34 = vsel %vm431_vm2, %v432_v26, %v433_v16  ;;  %v936_v26 = vstv %s1490_s6  ;;  %s1500_s25 = sld [smem:[#allocation2 + $0xe]]  ;;  %s1503_s6 = sld [smem:[#allocation2 + $0x1a]] }
  0xec   : > { %838 = vrot.lane.b32.xlu1 %v835_v38, %s1684_s7  ;;  %836 = vrot.lane.b32.xlu0 %v833_v39, %s1684_s7  ;;  %s1499_s7 = sld [smem:[#allocation2 + $0xa]] }
  0xf0   : > { %867 = vrot.lane.b32.xlu1 %v864_v28, %s1685_s8  ;;  %865 = vrot.lane.b32.xlu0 %v862_v42, %s1685_s8  ;;  %s1494_s8 = sld [smem:[#allocation2 + $0x15]] }
 0x10e   : > { %v214_v43 = vpop.permute.xlu1 %213  ;;  %v212_v44 = vpop.permute.xlu0 %211 }
 0x10f   : > { %v218_v4 = vadd.f32 %v214_v43, %v194_v62  ;;  %v217_v5 = vadd.f32 %v212_v44, %v193_v63 }
 0x112   : > { %v236_v45 = vpop.permute.xlu1 %235  ;;  %v234_v46 = vpop.permute.xlu0 %233 }
 0x113   : > { %v240_v6 = vadd.f32 %v236_v45, %v218_v4  ;;  %v239_v7 = vadd.f32 %v234_v46, %v217_v5 }
 0x116   : > { %v266_v47 = vpop.permute.xlu1 %265  ;;  %v264_v48 = vpop.permute.xlu0 %263 }
 0x117   : > { %v270_v12 = vadd.f32 %v266_v47, %v240_v6  ;;  %v269_v13 = vadd.f32 %v264_v48, %v239_v7 }
 0x11a   : > { %v295_v49 = vpop.permute.xlu1 %294  ;;  %v293_v50 = vpop.permute.xlu0 %292 }
 0x11b   : > { %v299_v14 = vadd.f32 %v295_v49, %v270_v12  ;;  %v298_v15 = vadd.f32 %v293_v50, %v269_v13 }
 0x11e   : > { %v324_v51 = vpop.permute.xlu1 %323  ;;  %v322_v52 = vpop.permute.xlu0 %321 }
 0x11f   : > { %v328_v23 = vadd.f32 %v324_v51, %v299_v14  ;;  %v327_v20 = vadd.f32 %v322_v52, %v298_v15 }
 0x122   : > { %v354_v53 = vpop.permute.xlu1 %353  ;;  %v352_v54 = vpop.permute.xlu0 %351 }
 0x123   : > { %v358_v21 = vadd.f32 %v354_v53, %v328_v23  ;;  %v357_v25 = vadd.f32 %v352_v54, %v327_v20 }
 0x126   : > { %v383_v56 = vpop.permute.xlu1 %382  ;;  %v381_v57 = vpop.permute.xlu0 %380 }
 0x127   : > { %v387_v30 = vadd.f32 %v383_v56, %v358_v21  ;;  %v386_v31 = vadd.f32 %v381_v57, %v357_v25 }
 0x12a   : > { %v412_v60 = vpop.permute.xlu1 %411  ;;  %v410_v61 = vpop.permute.xlu0 %409 }
 0x12b   : > { %v416_v32 = vadd.f32 %v412_v60, %v387_v30  ;;  %v415_v33 = vadd.f32 %v410_v61, %v386_v31  ;;  %v799_v60 = vmul.f32 %v2014_v55, %v1876_v22  ;;  %v950_v30 = vstv %s1491_s19  ;;  %s1509_s19 = sld [smem:[#allocation2 + $0x13]] }
 0x12d   : > { %v440_v2 = vadd.f32 %v1986_v24, %v416_v32  ;;  %v439_v37 = vadd.f32 %v434_v34, %v415_v33  ;;  %v806_v5 = vrot.slane %v799_v60, 6  ;;  %v964_v32 = vstv %s1492_s11  ;;  %s1504_s11 = sld [smem:[#allocation2 + $0x1e]] }
 0x12e   : > { %v465_v0 = vpop.permute.xlu1 %464  ;;  %v463_v3 = vpop.permute.xlu0 %462 }
 0x12f   : > { %v469_v40 = vadd.f32 %v465_v0, %v440_v2  ;;  %v468_v41 = vadd.f32 %v463_v3, %v439_v37  ;;  %v808_v14 = vsel %vm805_vm5, %v806_v5, %v807_v1  ;;  %v978_v37 = vstv %s1493_s24  ;;  %s1511_s24 = sld [smem:[#allocation2 + $0x1b]] }
 0x132   : > { %v494_v10 = vpop.permute.xlu1 %493  ;;  %v492_v11 = vpop.permute.xlu0 %491 }
 0x133   : > { %v498_v43 = vadd.f32 %v494_v10, %v469_v40  ;;  %v497_v44 = vadd.f32 %v492_v11, %v468_v41  ;;  %v1062_v40 = vstv %s1499_s7  ;;  %s1512_s7 = sld [smem:[#allocation2 + $0x1f]] }
 0x136   : > { %v523_v18 = vpop.permute.xlu1 %522  ;;  %v521_v19 = vpop.permute.xlu0 %520 }
 0x137   : > { %v527_v45 = vadd.f32 %v523_v18, %v498_v43  ;;  %v526_v46 = vadd.f32 %v521_v19, %v497_v44 }
 0x13a   : > { %v552_v27 = vpop.permute.xlu1 %551  ;;  %v550_v29 = vpop.permute.xlu0 %549 }
 0x13b   : > { %v556_v9 = vadd.f32 %v552_v27, %v527_v45  ;;  %v555_v49 = vadd.f32 %v550_v29, %v526_v46  ;;  %v1076_v45 = vstv %s1500_s25  ;;  %s1497_s25 = sld [smem:[#allocation2 + $0x2]] }
 0x13e   : > { %v581_v35 = vpop.permute.xlu1 %580  ;;  %v579_v36 = vpop.permute.xlu0 %578 }
 0x13f   : > { %v585_v16 = vadd.f32 %v581_v35, %v556_v9  ;;  %v584_v50 = vadd.f32 %v579_v36, %v555_v49  ;;  %v1048_v35 = vstv %s1498_s17  ;;  %s1510_s17 = sld [smem:[#allocation2 + $0x17]] }
 0x142   : > { %v610_v38 = vpop.permute.xlu1 %609  ;;  %v608_v39 = vpop.permute.xlu0 %607 }
 0x143   : > { %v614_v24 = vadd.f32 %v610_v38, %v585_v16  ;;  %v613_v53 = vadd.f32 %v608_v39, %v584_v50  ;;  %v1006_v16 = vstv %s1495_s29  ;;  %s1693_s29 = smov 16  }
 0x146   : > { %v640_v28 = vpop.permute.xlu1 %639  ;;  %v638_v42 = vpop.permute.xlu0 %637 }
 0x147   : > { %v644_v54 = vadd.f32 %v640_v28, %v614_v24  ;;  %v643_v56 = vadd.f32 %v638_v42, %v613_v53  ;;  %v992_v42 = vstv %s1494_s8  ;;  %s1489_s8 = sld [smem:[#allocation2 + $0x1]] }
 0x14a   : > { %v669_v47 = vpop.permute.xlu1 %668  ;;  %v667_v48 = vpop.permute.xlu0 %666 }
 0x14b   : > { %v673_v61 = vadd.f32 %v669_v47, %v644_v54  ;;  %v672_v62 = vadd.f32 %v667_v48, %v643_v56  ;;  %v1160_v48 = vstv %s1506_s26  ;;  %v1174_v54 = vstv %s1507_s4  ;;  %s1505_s26 = sld [smem:[#allocation2 + $0x3]]  ;;  %s1694_s4 = smov 32  }
 0x14e   : > { %v698_v51 = vpop.permute.xlu1 %697  ;;  %v696_v52 = vpop.permute.xlu0 %695 }
 0x14f   : > { %v702_v63 = vadd.f32 %v698_v51, %v673_v61  ;;  %v701_v0 = vadd.f32 %v696_v52, %v672_v62  ;;  %v1090_v52 = vstv %s1501_s30  ;;  %v1104_v62 = vstv %s1502_s9  ;;  %s1484_s30 = sld [smem:[#allocation2 + $0xc]]  ;;  %s1695_s9 = smov 48  }
 0x152   : > { %v728_v57 = vpop.permute.xlu1 %727  ;;  %v726_v58 = vpop.permute.xlu0 %725 }
 0x153   : > { %v732_v6 = vadd.f32 %v728_v57, %v702_v63  ;;  %v731_v7 = vadd.f32 %v726_v58, %v701_v0  ;;  %v1020_v58 = vstv %s1496_s28  ;;  %s1486_s28 = sld [smem:[#allocation2 + $0x14]] }
 0x156   : > { %v757_v3 = vpop.permute.xlu1 %756  ;;  %v755_v4 = vpop.permute.xlu0 %754 }
 0x157   : > { %v761_v10 = vadd.f32 %v757_v3, %v732_v6  ;;  %v760_v11 = vadd.f32 %v755_v4, %v731_v7  ;;  %v1188_v3 = vstv %s1508_s10  ;;  %v1118_v6 = vstv %s1503_s6  ;;  %s1487_s10 = sld [smem:[#allocation2 + $0x18]]  ;;  %s1488_s6 = sld [smem:[#allocation2 + $0x1c]] }
 0x15a   : > { %v786_v12 = vpop.permute.xlu1 %785  ;;  %v784_v13 = vpop.permute.xlu0 %783 }
 0x15b   : > { %v790_v15 = vadd.f32 %v786_v12, %v761_v10  ;;  %v789_v22 = vadd.f32 %v784_v13, %v760_v11  ;;  %v1202_v11 = vstv %s1509_s19  ;;  %s1696_s19 = smov 64  }
 0x15d   : > { %v814_v55 = vadd.f32 %v2035_v8, %v790_v15  ;;  %v813_v17 = vadd.f32 %v808_v14, %v789_v22  ;;  %v1132_v14 = vstv %s1504_s11  ;;  %s1697_s11 = smov 80  }
 0x15e   : > { %v839_v18 = vpop.permute.xlu1 %838  ;;  %v837_v19 = vpop.permute.xlu0 %836 }
 0x15f   : > { %v843_v23 = vadd.f32 %v839_v18, %v814_v55  ;;  %v842_v20 = vadd.f32 %v837_v19, %v813_v17  ;;  %v1216_v55 = vstv %s1510_s17  ;;  %v1230_v19 = vstv %s1511_s24  ;;  %s873_s17 = sld [smem:[#allocation2]]  ;;  %s1698_s24 = smov 96  }
 0x162   : > { %v868_v21 = vpop.permute.xlu1 %867  ;;  %v866_v25 = vpop.permute.xlu0 %865 }
 0x163   : > { %v2081_v27 = vadd.f32 %v868_v21, %v843_v23  ;;  %v2083_v59 = vadd.f32 %v866_v25, %v842_v20  ;;  %v1244_v21 = vstv %s1512_s7  ;;  %s1699_s7 = smov 112  }
 0x165   : > { %v938_v1 = vmul.f32 %v936_v26, %v2081_v27  ;;  %v937_v29 = vmul.f32 %v936_v26, %v2083_v59  ;;  %v952_v8 = vmul.f32 %v950_v30, %v2081_v27  ;;  %v951_v31 = vmul.f32 %v950_v30, %v2083_v59 }
 0x166   : > { %v966_v33 = vmul.f32 %v964_v32, %v2081_v27  ;;  %v965_v34 = vmul.f32 %v964_v32, %v2083_v59  ;;  %v1050_v36 = vmul.f32 %v1048_v35, %v2081_v27  ;;  %v1049_v2 = vmul.f32 %v1048_v35, %v2083_v59 }
 0x167   : > { %943 = vrot.lane.b32.xlu1 %v938_v1, %s1690_s20  ;;  %941 = vrot.lane.b32.xlu0 %v937_v29, %s1690_s20  ;;  %v980_v38 = vmul.f32 %v978_v37, %v2081_v27  ;;  %v979_v39 = vmul.f32 %v978_v37, %v2083_v59  ;;  %v1064_v41 = vmul.f32 %v1062_v40, %v2081_v27  ;;  %v922_v1 = vstv %s1489_s8  ;;  %s175_s8 = sand.u32 1, %s1667_s13  }
 0x168   : > { %v1063_v28 = vmul.f32 %v1062_v40, %v2083_v59  ;;  %v994_v43 = vmul.f32 %v992_v42, %v2081_v27  ;;  %v993_v44 = vmul.f32 %v992_v42, %v2083_v59  ;;  %v1078_v46 = vmul.f32 %v1076_v45, %v2081_v27 }
 0x169   : > { %v1077_v47 = vmul.f32 %v1076_v45, %v2083_v59  ;;  %v1162_v9 = vmul.f32 %v1160_v48, %v2081_v27  ;;  %v1161_v49 = vmul.f32 %v1160_v48, %v2083_v59  ;;  %v1008_v50 = vmul.f32 %v1006_v16, %v2081_v27 }
 0x16a   : > { %v1007_v51 = vmul.f32 %v1006_v16, %v2083_v59  ;;  %v1092_v24 = vmul.f32 %v1090_v52, %v2081_v27  ;;  %v1091_v53 = vmul.f32 %v1090_v52, %v2083_v59  ;;  %v1176_v56 = vmul.f32 %v1174_v54, %v2081_v27 }
 0x16b   : > { %957 = vrot.lane.b32.xlu1 %v952_v8, %s1690_s20  ;;  %955 = vrot.lane.b32.xlu0 %v951_v31, %s1690_s20  ;;  %v1175_v57 = vmul.f32 %v1174_v54, %v2083_v59  ;;  %v1022_v60 = vmul.f32 %v1020_v58, %v2081_v27  ;;  %v1021_v61 = vmul.f32 %v1020_v58, %v2083_v59  ;;  %v1034_v8 = vstv %s1497_s25  ;;  %s1431_s25 = sshll.u32 %s175_s8, 4 }
 0x16c   : > { %v1106_v63 = vmul.f32 %v1104_v62, %v2081_v27  ;;  %v1105_v0 = vmul.f32 %v1104_v62, %v2083_v59  ;;  %v1190_v4 = vmul.f32 %v1188_v3, %v2081_v27  ;;  %v1189_v5 = vmul.f32 %v1188_v3, %v2083_v59 }
 0x16d   : > { %v1120_v7 = vmul.f32 %v1118_v6, %v2081_v27  ;;  %v1119_v10 = vmul.f32 %v1118_v6, %v2083_v59  ;;  %v1204_v12 = vmul.f32 %v1202_v11, %v2081_v27  ;;  %v1203_v13 = vmul.f32 %v1202_v11, %v2083_v59 }
 0x16e   : > { %v1134_v15 = vmul.f32 %v1132_v14, %v2081_v27  ;;  %v1133_v22 = vmul.f32 %v1132_v14, %v2083_v59  ;;  %v1218_v17 = vmul.f32 %v1216_v55, %v2081_v27  ;;  %v1217_v18 = vmul.f32 %v1216_v55, %v2083_v59 }
 0x16f   : > { %971 = vrot.lane.b32.xlu1 %v966_v33, %s1690_s20  ;;  %969 = vrot.lane.b32.xlu0 %v965_v34, %s1690_s20  ;;  %v1232_v23 = vmul.f32 %v1230_v19, %v2081_v27  ;;  %v1231_v20 = vmul.f32 %v1230_v19, %v2083_v59  ;;  %v1246_v25 = vmul.f32 %v1244_v21, %v2081_v27  ;;  %v1146_v33 = vstv %s1505_s26  ;;  %s2224_s26 = scalar_lea.vmem [#allocation5], %s1431_s25 }
 0x170   : > { %v1245_v26 = vmul.f32 %v1244_v21, %v2083_v59  ;;  %v924_v29 = vmul.f32 %v922_v1, %v2081_v27  ;;  %v923_v30 = vmul.f32 %v922_v1, %v2083_v59  ;;  %v1036_v31 = vmul.f32 %v1034_v8, %v2081_v27 }
 0x171   : > { %v1035_v32 = vmul.f32 %v1034_v8, %v2083_v59  ;;  %v1148_v34 = vmul.f32 %v1146_v33, %v2081_v27  ;;  %v1147_v35 = vmul.f32 %v1146_v33, %v2083_v59 }
 0x173   : > { %1055 = vrot.lane.b32.xlu1 %v1050_v36, %s1691_s27  ;;  %1053 = vrot.lane.b32.xlu0 %v1049_v2, %s1691_s27 }
 0x177   : > { %985 = vrot.lane.b32.xlu1 %v980_v38, %s1690_s20  ;;  %983 = vrot.lane.b32.xlu0 %v979_v39, %s1690_s20 }
 0x17b   : > { %1069 = vrot.lane.b32.xlu1 %v1064_v41, %s1691_s27  ;;  %1067 = vrot.lane.b32.xlu0 %v1063_v28, %s1691_s27 }
 0x17f   : > { %999 = vrot.lane.b32.xlu1 %v994_v43, %s1690_s20  ;;  %997 = vrot.lane.b32.xlu0 %v993_v44, %s1690_s20 }
 0x183   : > { %1083 = vrot.lane.b32.xlu1 %v1078_v46, %s1691_s27  ;;  %1081 = vrot.lane.b32.xlu0 %v1077_v47, %s1691_s27 }
 0x187   : > { %1167 = vrot.lane.b32.xlu1 %v1162_v9, %s1692_s5  ;;  %1165 = vrot.lane.b32.xlu0 %v1161_v49, %s1692_s5 }
 0x18b   : > { %1013 = vrot.lane.b32.xlu1 %v1008_v50, %s1690_s20  ;;  %1011 = vrot.lane.b32.xlu0 %v1007_v51, %s1690_s20 }
 0x18f   : > { %1097 = vrot.lane.b32.xlu1 %v1092_v24, %s1691_s27  ;;  %1095 = vrot.lane.b32.xlu0 %v1091_v53, %s1691_s27 }
 0x193   : > { %1181 = vrot.lane.b32.xlu1 %v1176_v56, %s1692_s5  ;;  %1179 = vrot.lane.b32.xlu0 %v1175_v57, %s1692_s5 }
 0x197   : > { %1027 = vrot.lane.b32.xlu1 %v1022_v60, %s1690_s20  ;;  %1025 = vrot.lane.b32.xlu0 %v1021_v61, %s1690_s20 }
 0x19b   : > { %1111 = vrot.lane.b32.xlu1 %v1106_v63, %s1691_s27  ;;  %1109 = vrot.lane.b32.xlu0 %v1105_v0, %s1691_s27 }
 0x19f   : > { %1195 = vrot.lane.b32.xlu1 %v1190_v4, %s1692_s5  ;;  %1193 = vrot.lane.b32.xlu0 %v1189_v5, %s1692_s5 }
 0x1a3   : > { %1125 = vrot.lane.b32.xlu1 %v1120_v7, %s1691_s27  ;;  %1123 = vrot.lane.b32.xlu0 %v1119_v10, %s1691_s27 }
 0x1a7   : > { %1209 = vrot.lane.b32.xlu1 %v1204_v12, %s1692_s5  ;;  %1207 = vrot.lane.b32.xlu0 %v1203_v13, %s1692_s5 }
 0x1ab   : > { %1139 = vrot.lane.b32.xlu1 %v1134_v15, %s1691_s27  ;;  %1137 = vrot.lane.b32.xlu0 %v1133_v22, %s1691_s27  ;;  %v892_v15 = vstv %s1484_s30 }
 0x1af   : > { %1223 = vrot.lane.b32.xlu1 %v1218_v17, %s1692_s5  ;;  %1221 = vrot.lane.b32.xlu0 %v1217_v18, %s1692_s5  ;;  %v894_v17 = vmul.f32 %v892_v15, %v2081_v27  ;;  %v893_v18 = vmul.f32 %v892_v15, %v2083_v59 }
 0x1b3   : > { %1237 = vrot.lane.b32.xlu1 %v1232_v23, %s1692_s5  ;;  %1235 = vrot.lane.b32.xlu0 %v1231_v20, %s1692_s5 }
 0x1b7   : > { %1251 = vrot.lane.b32.xlu1 %v1246_v25, %s1692_s5  ;;  %1249 = vrot.lane.b32.xlu0 %v1245_v26, %s1692_s5 }
 0x1bb   : > { %929 = vrot.lane.b32.xlu1 %v924_v29, %s1690_s20  ;;  %927 = vrot.lane.b32.xlu0 %v923_v30, %s1690_s20  ;;  %s1482_s20 = sld [smem:[#allocation2 + $0x4]] }
 0x1bf   : > { %1041 = vrot.lane.b32.xlu1 %v1036_v31, %s1691_s27  ;;  %1039 = vrot.lane.b32.xlu0 %v1035_v32, %s1691_s27  ;;  %s1483_s27 = sld [smem:[#allocation2 + $0x8]] }
 0x1c1   : > { %v880_v46 = vstv %s1482_s20  ;;  %s1518_s20 = sshll.u32 %s1744_s16, 8  ;;  %s2253_s16 = scalar_lea.sflag [#allocation3], %s175_s8 }
 0x1c2   : > { %v882_v9 = vmul.f32 %v880_v46, %v2081_v27  ;;  %v881_v49 = vmul.f32 %v880_v46, %v2083_v59 }
 0x1c3   : > { %1153 = vrot.lane.b32.xlu1 %v1148_v34, %s1692_s5  ;;  %1151 = vrot.lane.b32.xlu0 %v1147_v35, %s1692_s5  ;;  %s1485_s5 = sld [smem:[#allocation2 + $0x10]] }
 0x1c5   : > { %v886_v60 = vstv %s1483_s27  ;;  %s1351_s27 = sshll.u32 %s2224_s26, 4  ;;  %s2247_s27 = int_to_ptr.vmem [resolvable:$true] %s1351_s27 }
 0x1c6   : > { %v888_v63 = vmul.f32 %v886_v60, %v2081_v27  ;;  %v887_v0 = vmul.f32 %v886_v60, %v2083_v59 }
 0x1c9   : > { %v898_v1 = vstv %s1485_s5  ;;  %s1609_s5 = scalar_lea.vmem %s2247_s27, 256 }
 0x1ca   : > { %v900_v32 = vmul.f32 %v898_v1, %v2081_v27  ;;  %v899_v33 = vmul.f32 %v898_v1, %v2083_v59  ;;  %p1610_p10 = scmp.ne.s32.totalorder %s2247_s27, %s1609_s5 }
 0x1cc   : > { %p1611_p11 = pnand %p1610_p10, %p1761_p5 }
 0x1ce   : > { %p1612_p12 = pneg %p1611_p11 }
 0x1d9   : > { %v944_v36 = vpop.permute.xlu1 %943  ;;  %v942_v2 = vpop.permute.xlu0 %941 }
 0x1da   : > { %v948_v51 = vadd.f32 %v944_v36, %v882_v9  ;;  %v947_v52 = vadd.f32 %v942_v2, %v881_v49  ;;  %v910_v9 = vstv %s1487_s10 }
 0x1dd   : > { %v958_v37 = vpop.permute.xlu1 %957  ;;  %v956_v38 = vpop.permute.xlu0 %955 }
 0x1de   : > { %v962_v5 = vadd.f32 %v958_v37, %v888_v63  ;;  %v961_v6 = vadd.f32 %v956_v38, %v887_v0 }
 0x1e1   : > { %v972_v39 = vpop.permute.xlu1 %971  ;;  %v970_v40 = vpop.permute.xlu0 %969 }
 0x1e2   : > { %v976_v20 = vadd.f32 %v972_v39, %v894_v17  ;;  %v975_v21 = vadd.f32 %v970_v40, %v893_v18  ;;  %v904_v39 = vstv %s1486_s28  ;;  %v874_v17 = vstv %s873_s17  ;;  %s1700_s28 = smov [#allocation5]  }
 0x1e3   : > { %v905_v46 = vmul.f32 %v904_v39, %v2083_v59 }
 0x1e5   : > { %v1056_v41 = vpop.permute.xlu1 %1055  ;;  %v1054_v28 = vpop.permute.xlu0 %1053 }
 0x1e6   : > { %v1060_v24 = vadd.f32 %v1056_v41, %v948_v51  ;;  %v1059_v53 = vadd.f32 %v1054_v28, %v947_v52  ;;  %v912_v51 = vmul.f32 %v910_v9, %v2081_v27  ;;  %v911_v52 = vmul.f32 %v910_v9, %v2083_v59 }
 0x1e9   : > { %v2181_v42 = vpop.permute.xlu1 %985  ;;  %v2183_v43 = vpop.permute.xlu0 %983 }
 0x1ea   : > { %v990_v36 = vadd.f32 %v2181_v42, %v900_v32  ;;  %v989_v2 = vadd.f32 %v2183_v43, %v899_v33 }
 0x1ed   : > { %v1070_v44 = vpop.permute.xlu1 %1069  ;;  %v1068_v45 = vpop.permute.xlu0 %1067 }
 0x1ee   : > { %v1074_v7 = vadd.f32 %v1070_v44, %v962_v5  ;;  %v1073_v10 = vadd.f32 %v1068_v45, %v961_v6  ;;  %v906_v45 = vmul.f32 %v904_v39, %v2081_v27 }
 0x1f1   : > { %v2185_v47 = vpop.permute.xlu1 %999  ;;  %v2187_v48 = vpop.permute.xlu0 %997 }
 0x1f2   : > { %v1004_v43 = vadd.f32 %v2185_v47, %v906_v45 }
 0x1f5   : > { %v1084_v16 = vpop.permute.xlu1 %1083  ;;  %v1082_v50 = vpop.permute.xlu0 %1081 }
 0x1f6   : > { %v1088_v25 = vadd.f32 %v1084_v16, %v976_v20  ;;  %v1087_v26 = vadd.f32 %v1082_v50, %v975_v21  ;;  %v1003_v16 = vadd.f32 %v2187_v48, %v905_v46  ;;  %v916_v50 = vstv %s1488_s6 }
 0x1f7   : > { %v918_v0 = vmul.f32 %v916_v50, %v2081_v27  ;;  %v917_v47 = vmul.f32 %v916_v50, %v2083_v59 }
 0x1f9   : > { %v1168_v54 = vpop.permute.xlu1 %1167  ;;  %v1166_v56 = vpop.permute.xlu0 %1165 }
 0x1fa   : > { %v1172_v57 = vadd.f32 %v1168_v54, %v1060_v24  ;;  %v1171_v58 = vadd.f32 %v1166_v56, %v1059_v53 }
 0x1fc   : > { %1264 = vrot.lane.b32.xlu1 %v1172_v57, %s1693_s29  ;;  %1262 = vrot.lane.b32.xlu0 %v1171_v58, %s1693_s29 }
 0x1fd   : > { %v2191_v61 = vpop.permute.xlu1 %1013  ;;  %v2193_v62 = vpop.permute.xlu0 %1011 }
 0x1fe   : > { %v1018_v57 = vadd.f32 %v2191_v61, %v912_v51  ;;  %v1017_v58 = vadd.f32 %v2193_v62, %v911_v52 }
 0x201   : > { %v1098_v3 = vpop.permute.xlu1 %1097  ;;  %v1096_v4 = vpop.permute.xlu0 %1095 }
 0x202   : > { %v1102_v37 = vadd.f32 %v1098_v3, %v990_v36  ;;  %v1101_v38 = vadd.f32 %v1096_v4, %v989_v2 }
 0x205   : > { %v1182_v11 = vpop.permute.xlu1 %1181  ;;  %v1180_v12 = vpop.permute.xlu0 %1179 }
 0x206   : > { %v1186_v13 = vadd.f32 %v1182_v11, %v1074_v7  ;;  %v1185_v14 = vadd.f32 %v1180_v12, %v1073_v10 }
 0x208   : > { %1275 = vrot.lane.b32.xlu1 %v1186_v13, %s1694_s4  ;;  %1273 = vrot.lane.b32.xlu0 %v1185_v14, %s1694_s4  ;;  %s2245_s4 = scalar_lea.hbm %s2297_s3, %s1518_s20 }
 0x209   : > { %v2197_v22 = vpop.permute.xlu1 %1027  ;;  %v2199_v55 = vpop.permute.xlu0 %1025 }
 0x20a   : > { %v1032_v6 = vadd.f32 %v2197_v22, %v918_v0  ;;  %v1031_v61 = vadd.f32 %v2199_v55, %v917_v47  ;;  %v876_v55 = vmul.f32 %v874_v17, %v2081_v27 }
 0x20d   : > { %v1112_v19 = vpop.permute.xlu1 %1111  ;;  %v1110_v23 = vpop.permute.xlu0 %1109 }
 0x20e   : > { %v1116_v24 = vadd.f32 %v1112_v19, %v1004_v43  ;;  %v1115_v53 = vadd.f32 %v1110_v23, %v1003_v16  ;;  %v875_v19 = vmul.f32 %v874_v17, %v2083_v59 }
 0x211   : > { %v1196_v29 = vpop.permute.xlu1 %1195  ;;  %v1194_v30 = vpop.permute.xlu0 %1193 }
 0x212   : > { %v1200_v8 = vadd.f32 %v1196_v29, %v1088_v25  ;;  %v1199_v31 = vadd.f32 %v1194_v30, %v1087_v26 }
 0x214   : > { %1286 = vrot.lane.b32.xlu1 %v1200_v8, %s1695_s9  ;;  %1284 = vrot.lane.b32.xlu0 %v1199_v31, %s1695_s9  ;;  %s1613_s9 = sshll.u32 %s1700_s28, 4  ;;  %s1614_s9 = int_to_ptr.vmem [resolvable:$false] %s1613_s9 }
 0x215   : > { %v1126_v34 = vpop.permute.xlu1 %1125  ;;  %v1124_v35 = vpop.permute.xlu0 %1123  ;;  %s1615_s10 = scalar_lea.vmem %s1614_s9, 512  ;;  %p1616_p13 = scmp.lt.s32.totalorder %s2247_s27, %s1614_s9 }
 0x216   : > { %v1130_v48 = vadd.f32 %v1126_v34, %v1018_v57  ;;  %v1129_v3 = vadd.f32 %v1124_v35, %v1017_v58  ;;  %p1617_p0 = scmp.lt.s32.totalorder %s1615_s10, %s1609_s5 }
 0x218   : > { %p1618_p1 = por %p1617_p0, %p1616_p13 }
 0x219   : > { %v1210_v40 = vpop.permute.xlu1 %1209  ;;  %v1208_v41 = vpop.permute.xlu0 %1207 }
 0x21a   : > { %v1214_v28 = vadd.f32 %v1210_v40, %v1102_v37  ;;  %v1213_v44 = vadd.f32 %v1208_v41, %v1101_v38  ;;  %p1619_p2 = pnand %p1618_p1, %p1612_p12 }
 0x21c   : > { %1297 = vrot.lane.b32.xlu1 %v1214_v28, %s1696_s19  ;;  %1295 = vrot.lane.b32.xlu0 %v1213_v44, %s1696_s19 }
 0x21d   : > { %v1140_v49 = vpop.permute.xlu1 %1139  ;;  %v1138_v42 = vpop.permute.xlu0 %1137 }
 0x21e   : > { %v1144_v10 = vadd.f32 %v1140_v49, %v1032_v6  ;;  %v1143_v11 = vadd.f32 %v1138_v42, %v1031_v61 }
 0x221   : > { %v1224_v54 = vpop.permute.xlu1 %1223  ;;  %v1222_v56 = vpop.permute.xlu0 %1221 }
 0x222   : > { %v1228_v60 = vadd.f32 %v1224_v54, %v1116_v24  ;;  %v1227_v63 = vadd.f32 %v1222_v56, %v1115_v53 }
 0x224   : > { %1308 = vrot.lane.b32.xlu1 %v1228_v60, %s1697_s11  ;;  %1306 = vrot.lane.b32.xlu0 %v1227_v63, %s1697_s11 }
 0x225   : > { %v1238_v4 = vpop.permute.xlu1 %1237  ;;  %v1236_v5 = vpop.permute.xlu0 %1235 }
 0x226   : > { %v1242_v7 = vadd.f32 %v1238_v4, %v1130_v48  ;;  %v1241_v62 = vadd.f32 %v1236_v5, %v1129_v3 }
 0x228   : > { %1319 = vrot.lane.b32.xlu1 %v1242_v7, %s1698_s24  ;;  %1317 = vrot.lane.b32.xlu0 %v1241_v62, %s1698_s24 }
 0x229   : > { %v1252_v12 = vpop.permute.xlu1 %1251  ;;  %v1250_v13 = vpop.permute.xlu0 %1249 }
 0x22a   : > { %v1256_v14 = vadd.f32 %v1252_v12, %v1144_v10  ;;  %v1255_v15 = vadd.f32 %v1250_v13, %v1143_v11 }
 0x22c   : > { %1330 = vrot.lane.b32.xlu1 %v1256_v14, %s1699_s7  ;;  %1328 = vrot.lane.b32.xlu0 %v1255_v15, %s1699_s7 }
 0x22d   : > { %v930_v22 = vpop.permute.xlu1 %929  ;;  %v928_v18 = vpop.permute.xlu0 %927 }
 0x22e   : > { %v934_v21 = vadd.f32 %v930_v22, %v876_v55  ;;  %v933_v25 = vadd.f32 %v928_v18, %v875_v19 }
 0x231   : > { %v1042_v23 = vpop.permute.xlu1 %1041  ;;  %v1040_v20 = vpop.permute.xlu0 %1039 }
 0x232   : > { %v1046_v26 = vadd.f32 %v1042_v23, %v934_v21  ;;  %v1045_v1 = vadd.f32 %v1040_v20, %v933_v25 }
 0x235   : > { %v1154_v29 = vpop.permute.xlu1 %1153  ;;  %v1152_v30 = vpop.permute.xlu0 %1151 }
 0x236   : > { %v1158_v8 = vadd.f32 %v1154_v29, %v1046_v26  ;;  %v1157_v31 = vadd.f32 %v1152_v30, %v1045_v1 }
 0x238   : > { %1259 = vst.msk [vmem:[%s2224_s26 + $0x8] sm:$0xff] %vm1257_vm6, %v1158_v8  ;;  %1258 = vst.msk [vmem:[%s2224_s26] sm:$0xff] %vm1257_vm6, %v1157_v31 }
 0x26e   : > { %v1265_v27 = vpop.permute.xlu1 %1264  ;;  %v1263_v59 = vpop.permute.xlu0 %1262 }
 0x26f   : > { %1270 = vst.msk [vmem:[%s2224_s26 + $0x8] sm:$0xff] %vm1268_vm7, %v1265_v27  ;;  %1269 = vst.msk [vmem:[%s2224_s26] sm:$0xff] %vm1268_vm7, %v1263_v59 }
 0x27a   : > { %v1276_v32 = vpop.permute.xlu1 %1275  ;;  %v1274_v33 = vpop.permute.xlu0 %1273 }
 0x27b   : > { %1281 = vst.msk [vmem:[%s2224_s26 + $0x8] sm:$0xff] %vm1279_vm8, %v1276_v32  ;;  %1280 = vst.msk [vmem:[%s2224_s26] sm:$0xff] %vm1279_vm8, %v1274_v33 }
 0x286   : > { %v1287_v34 = vpop.permute.xlu1 %1286  ;;  %v1285_v35 = vpop.permute.xlu0 %1284 }
 0x287   : > { %1292 = vst.msk [vmem:[%s2224_s26 + $0x8] sm:$0xff] %vm1290_vm9, %v1287_v34  ;;  %1291 = vst.msk [vmem:[%s2224_s26] sm:$0xff] %vm1290_vm9, %v1285_v35 }
 0x28e   : > { %v1298_v36 = vpop.permute.xlu1 %1297  ;;  %v1296_v2 = vpop.permute.xlu0 %1295 }
 0x28f   : > { %1303 = vst.msk [vmem:[%s2224_s26 + $0x8] sm:$0xff] %vm1301_vm10, %v1298_v36  ;;  %1302 = vst.msk [vmem:[%s2224_s26] sm:$0xff] %vm1301_vm10, %v1296_v2 }
 0x296   : > { %v1309_v37 = vpop.permute.xlu1 %1308  ;;  %v1307_v38 = vpop.permute.xlu0 %1306 }
 0x297   : > { %1314 = vst.msk [vmem:[%s2224_s26 + $0x8] sm:$0xff] %vm1312_vm11, %v1309_v37  ;;  %1313 = vst.msk [vmem:[%s2224_s26] sm:$0xff] %vm1312_vm11, %v1307_v38 }
 0x29a   : > { %v1320_v39 = vpop.permute.xlu1 %1319  ;;  %v1318_v40 = vpop.permute.xlu0 %1317 }
 0x29b   : > { %1325 = vst.msk [vmem:[%s2224_s26 + $0x8] sm:$0xff] %vm1323_vm12, %v1320_v39  ;;  %1324 = vst.msk [vmem:[%s2224_s26] sm:$0xff] %vm1323_vm12, %v1318_v40 }
 0x29e   : > { %v1331_v41 = vpop.permute.xlu1 %1330  ;;  %v1329_v28 = vpop.permute.xlu0 %1328 }
 0x29f   : > { %1336 = vst.msk [vmem:[%s2224_s26 + $0x8] sm:$0xff] %vm1334_vm13, %v1331_v41  ;;  %1335 = vst.msk [vmem:[%s2224_s26] sm:$0xff] %vm1334_vm13, %v1329_v28 }
 0x2a0   : > { %1622 = shalt.err (!%p1619_p2)
}
 0x2a1   : > { %s1623_s6 = scalar_lea.hbm %s2245_s4, 256  ;;  %s1627_s17 = scalar_lea.hbm %s2297_s3, 512 }
 0x2a2   : > { %p1624_p3 = scmp.ne.s32.totalorder %s2245_s4, %s1623_s6  ;;  %p1628_p8 = scmp.lt.u32.totalorder %s2245_s4, %s2297_s3 }
 0x2a3   : > { %p1629_p9 = scmp.lt.u32.totalorder %s1627_s17, %s1623_s6  ;;  %p1631_p11 = scmp.lt.u32.totalorder %s1623_s6, %s2245_s4 }
 0x2a4   : > { %p1625_p4 = pnand %p1624_p3, %p1761_p5 }
 0x2a5   : > { %p1630_p10 = por %p1629_p9, %p1628_p8 }
 0x2a6   : > { %p1626_p7 = pneg %p1625_p4 }
 0x2a7   : > { %p1632_p12 = por %p1631_p11, %p1630_p10 }
 0x2a9   : > { %p1633_p13 = pnand %p1632_p12, %p1626_p7 }
 0x2ab   : > { %1636 = shalt.err (!%p1633_p13)
}
 0x2ac   : > { %s1701_s8 = smov 128   ;;  %s1702_s25 = smov 8  }
 0x2ad   : > { %1524 = dma.vmem_to_hbm [thread:$0]  (%p1761_p5), %s2247_s27, 256, %s2245_s4, %s2253_s16, %s1701_s8, %s1701_s8, %s1702_s25  }
 0x2ae PF: > { %p1536_p0 = scmp.ge.s32.totalorder %s1675_s15, 2  ;;  %s1366_s26 = sand.u32 1, %s1663_s12  }
 0x2af   : > { %s1367_s20 = scalar_lea.sflag [#allocation3], %s1366_s26 }
 0x2b0   : > { %p1531_p1 = pnand %p1536_p0, %p1765_p6 }
 0x2b2   : > { %1658 = dma.done.wait (!%p1531_p1), %s1367_s20, 256  }
 0x2b3   : > { %1660 = vsyncadd (!%p1531_p1), %s1367_s20, 4294967040  ;;  %p14_p2 = scmp.ge.s32.totalorder %s1748_s18, 4   ;;  %s2301_s12 = smov %s1667_s13 }
 0x2b4   : > { %s2302_s13 = smov %s1671_s14  ;;  %s2303_s14 = smov %s1759_s21 }
 0x2b5   : > { %s2304_s15 = smov %s1748_s18  ;;  %16 = sbr.rel (!%p14_p2) target bundleno = 4 (0x4), region = 96 }
 0x2bc   :  { %1372 = vsyncpa [#allocation3], 1 }
 0x2bd   :  { %1374 = vsyncpa [#allocation3 + $0x1], 1 }
 0x2be   :  { %1375 = vsyncpa [#allocation4], 1 }
 0x2bf   :  { %1377 = vsyncpa [#allocation4 + $0x1], 1 }

</bundles_post_ra>
